<compile_context>
chip_gen: v5e
topology: v5e:2x2
jax: 0.10.0
libtpu: 0.0.40
codegen_flags: <defaults>
</compile_context>

<pallas_src>
import jax
import jax.numpy as jnp
from jax import lax
from jax.experimental import pallas as pl
from jax.experimental.pallas import tpu as pltpu

# ---------------- small config consistent with the module's structure ----------
BATCH = 2
SEQ = 8
HIDDEN = 32
NUM_HEADS = 2
HEAD_DIM = HIDDEN // NUM_HEADS
INTERMEDIATE = 64
NUM_LAYERS = 2
VOCAB = 100
NUM_LABELS = 3
LOGIT_PAD = 128           # lane-dense padded logits / vector-slab width
TYPE_VOCAB = 2            # inner roberta token_type table (rows copied into sentence_embedding[1:])
SENT_VOCAB = 3            # nn.Embedding(3, hidden) in Class_Model
PAD_IDX = 1               # roberta padding_idx for position ids
MAX_POS = SEQ + PAD_IDX + 1
LN_EPS = 1e-5

# per-layer packed-vector slab row layout (width LOGIT_PAD, zero padded)
ROW_Q_B = 0                       # rows 0..nh-1   : per-head q bias (pre-scaled)
ROW_K_B = NUM_HEADS               # rows nh..2nh-1 : per-head k bias
ROW_V_B = 2 * NUM_HEADS           # rows 2nh..3nh-1: per-head v bias
ROW_AO_B = 3 * NUM_HEADS          # attention output-proj bias
ROW_ATTN_LN_G = ROW_AO_B + 1
ROW_ATTN_LN_B = ROW_AO_B + 2
ROW_I_B = ROW_AO_B + 3            # FFN intermediate bias (width INTERMEDIATE)
ROW_O_B = ROW_AO_B + 4
ROW_OUT_LN_G = ROW_AO_B + 5
ROW_OUT_LN_B = ROW_AO_B + 6
N_VEC = 16                        # pad rows to a sublane multiple

# global vector slab rows
GROW_EMB_LN_G = 0
GROW_EMB_LN_B = 1
GROW_CLS_DENSE_B = 2
GROW_CLS_OUT_B = 3


# ---------------- in-kernel helpers (operate on jnp values) ---------------------
def _layer_norm(x, g, b):
    mean = jnp.mean(x, axis=-1, keepdims=True)
    var = jnp.mean(jnp.square(x - mean), axis=-1, keepdims=True)
    return (x - mean) * lax.rsqrt(var + LN_EPS) * g + b


def _gelu_tanh(x):
    # TODO(synk): HF RoBERTa "gelu" is the exact erf variant; the tanh
    # approximation is used because its primitive set (mul/add/tanh) is
    # guaranteed to lower on Mosaic/EUP.  Max abs deviation ~1e-3.
    c = 0.7978845608028654  # sqrt(2/pi)
    return 0.5 * x * (1.0 + jnp.tanh(c * (x + 0.044715 * x * x * x)))


def _row(ref, *idx, width):
    """Load one lane-padded vector row from a packed slab ref as (1, width)."""
    r = idx[-1]
    full = ref[idx[:-1] + (slice(r, r + 1), slice(None))] if len(idx) > 1 \
        else ref[slice(r, r + 1), slice(None)]
    return full[:, :width]


# ---------------- single fused Pallas kernel ------------------------------------
def _fused_forward_kernel(
    x_ref,        # (B*S, H)           embedded inputs (pre-LayerNorm)
    bias_ref,     # (B*S, B*S)         additive attention bias (block-diag + key mask)
    attn_w_ref,   # (L, nh, 4, H, H)   per-head Wq(*scale)/Wk/Wv (cols dH: zero), Wao (rows dH: zero)
    ffn_w_ref,    # (L, 2, I, I)       [l,0,:H,:]=W_in, [l,1,:,:H]=W_out
    vecs_ref,     # (L, N_VEC, 128)    per-layer bias / LN vectors (lane padded)
    gvecs_ref,    # (4, 128)           emb LN g/b, cls dense bias, cls out bias (padded)
    cls_w_ref,    # (2, H, 128)        [0,:,:H]=cls dense W, [1,:,:3]=cls out W
    logits_ref,   # out: (B, LOGIT_PAD)
):
    H, I, S, B = HIDDEN, INTERMEDIATE, SEQ, BATCH

    # RobertaEmbeddings LayerNorm (dropout == identity in eval mode)
    x = _layer_norm(x_ref[...].astype(jnp.float32),
                    _row(gvecs_ref, GROW_EMB_LN_G, width=H),
                    _row(gvecs_ref, GROW_EMB_LN_B, width=H))

    attn_bias = bias_ref[...]                                # (B*S, B*S)

    for l in range(NUM_LAYERS):        # unrolled; weights stacked on layer axis
        # ----- self-attention (all batches at once via block-diagonal bias) -----
        resid = x
        acc = None
        for h in range(NUM_HEADS):
            wq = attn_w_ref[l, h, 0]                         # (H, H), cols dH: zero, pre-scaled
            wk = attn_w_ref[l, h, 1]
            wv = attn_w_ref[l, h, 2]
            wo = attn_w_ref[l, h, 3]                         # (H, H), rows dH: zero
            qh = jnp.dot(x, wq, preferred_element_type=jnp.float32) \
                + _row(vecs_ref, l, ROW_Q_B + h, width=H)
            kh = jnp.dot(x, wk, preferred_element_type=jnp.float32) \
                + _row(vecs_ref, l, ROW_K_B + h, width=H)
            vh = jnp.dot(x, wv, preferred_element_type=jnp.float32) \
                + _row(vecs_ref, l, ROW_V_B + h, width=H)
            # q @ k^T without an explicit transpose (contract on the hidden axis;
            # zero-padded head columns contribute nothing)
            s = lax.dot_general(qh, kh, (((1,), (1,)), ((), ())),
                                preferred_element_type=jnp.float32) + attn_bias
            s = s - jnp.max(s, axis=-1, keepdims=True)
            p = jnp.exp(s)
            p = p * pl.reciprocal(jnp.sum(p, axis=-1, keepdims=True), approx=True)
            ctx = jnp.dot(p, vh, preferred_element_type=jnp.float32)      # (B*S, H)
            contrib = jnp.dot(ctx, wo, preferred_element_type=jnp.float32)
            acc = contrib if acc is None else acc + contrib
        attn_out = acc + _row(vecs_ref, l, ROW_AO_B, width=H)
        x = _layer_norm(attn_out + resid,
                        _row(vecs_ref, l, ROW_ATTN_LN_G, width=H),
                        _row(vecs_ref, l, ROW_ATTN_LN_B, width=H))

        # ----- feed-forward -----
        resid = x
        w_in = ffn_w_ref[l, 0][:H, :]                        # (H, I)
        w_out = ffn_w_ref[l, 1][:, :H]                       # (I, H)
        inter = _gelu_tanh(jnp.dot(x, w_in, preferred_element_type=jnp.float32)
                           + _row(vecs_ref, l, ROW_I_B, width=I))
        out = jnp.dot(inter, w_out, preferred_element_type=jnp.float32) \
            + _row(vecs_ref, l, ROW_O_B, width=H)
        x = _layer_norm(out + resid,
                        _row(vecs_ref, l, ROW_OUT_LN_G, width=H),
                        _row(vecs_ref, l, ROW_OUT_LN_B, width=H))

    # ----- classification head: gather <s> rows FIRST, then 2 tiny matmuls -----
    x_cls = jnp.concatenate([x[b * S:b * S + 1, :] for b in range(B)], axis=0)  # (B, H)
    w_dense = cls_w_ref[0][:, :H]                                                # (H, H)
    h_cls = jnp.tanh(jnp.dot(x_cls, w_dense, preferred_element_type=jnp.float32)
                     + _row(gvecs_ref, GROW_CLS_DENSE_B, width=H))
    logits_ref[...] = (jnp.dot(h_cls, cls_w_ref[1],
                               preferred_element_type=jnp.float32)
                       + gvecs_ref[GROW_CLS_OUT_B:GROW_CLS_OUT_B + 1, :])


# ---------------- deterministic parameter init ----------------------------------
def init_params(key):
    keys = iter(jax.random.split(key, 64))

    def nrm(shape, scale=0.02):
        return scale * jax.random.normal(next(keys), shape, dtype=jnp.float32)

    word_emb = nrm((VOCAB, HIDDEN))
    pos_emb = nrm((MAX_POS, HIDDEN))
    token_type_emb = nrm((TYPE_VOCAB, HIDDEN))
    sentence_emb = nrm((SENT_VOCAB, HIDDEN))
    # __init__ quirk: sentence_embedding.weight.data[1:, :] <- token_type_embeddings
    sentence_emb = sentence_emb.at[1:1 + TYPE_VOCAB].set(token_type_emb)

    att_scale = 1.0 / (HEAD_DIM ** 0.5)

    attn_w_layers, ffn_w_layers, vec_layers = [], [], []
    for _ in range(NUM_LAYERS):
        q_w, k_w, v_w = nrm((HIDDEN, HIDDEN)), nrm((HIDDEN, HIDDEN)), nrm((HIDDEN, HIDDEN))
        q_b = jnp.zeros((HIDDEN,), jnp.float32)
        k_b = jnp.zeros((HIDDEN,), jnp.float32)
        v_b = jnp.zeros((HIDDEN,), jnp.float32)
        ao_w = nrm((HIDDEN, HIDDEN))
        ao_b = jnp.zeros((HIDDEN,), jnp.float32)
        i_w = nrm((HIDDEN, INTERMEDIATE))
        i_b = jnp.zeros((INTERMEDIATE,), jnp.float32)
        o_w = nrm((INTERMEDIATE, HIDDEN))
        o_b = jnp.zeros((HIDDEN,), jnp.float32)

        aw = jnp.zeros((NUM_HEADS, 4, HIDDEN, HIDDEN), jnp.float32)
        vecs = jnp.zeros((N_VEC, LOGIT_PAD), jnp.float32)
        for h in range(NUM_HEADS):
            sl = slice(h * HEAD_DIM, (h + 1) * HEAD_DIM)
            # per-head weights zero-padded to (H, H); 1/sqrt(dH) folded into Q
            aw = aw.at[h, 0, :, :HEAD_DIM].set(q_w[:, sl] * att_scale)
            aw = aw.at[h, 1, :, :HEAD_DIM].set(k_w[:, sl])
            aw = aw.at[h, 2, :, :HEAD_DIM].set(v_w[:, sl])
            aw = aw.at[h, 3, :HEAD_DIM, :].set(ao_w[sl, :])
            vecs = vecs.at[ROW_Q_B + h, :HEAD_DIM].set(q_b[sl] * att_scale)
            vecs = vecs.at[ROW_K_B + h, :HEAD_DIM].set(k_b[sl])
            vecs = vecs.at[ROW_V_B + h, :HEAD_DIM].set(v_b[sl])
        vecs = vecs.at[ROW_AO_B, :HIDDEN].set(ao_b)
        vecs = vecs.at[ROW_ATTN_LN_G, :HIDDEN].set(1.0)
        vecs = vecs.at[ROW_ATTN_LN_B, :HIDDEN].set(0.0)
        vecs = vecs.at[ROW_I_B, :INTERMEDIATE].set(i_b)
        vecs = vecs.at[ROW_O_B, :HIDDEN].set(o_b)
        vecs = vecs.at[ROW_OUT_LN_G, :HIDDEN].set(1.0)
        vecs = vecs.at[ROW_OUT_LN_B, :HIDDEN].set(0.0)

        fw = jnp.zeros((2, INTERMEDIATE, INTERMEDIATE), jnp.float32)
        fw = fw.at[0, :HIDDEN, :].set(i_w)
        fw = fw.at[1, :, :HIDDEN].set(o_w)

        attn_w_layers.append(aw)
        ffn_w_layers.append(fw)
        vec_layers.append(vecs)

    gvecs = jnp.zeros((4, LOGIT_PAD), jnp.float32)
    gvecs = gvecs.at[GROW_EMB_LN_G, :HIDDEN].set(1.0)     # emb LN gamma; beta / biases stay 0

    cls_w = jnp.zeros((2, HIDDEN, LOGIT_PAD), jnp.float32)
    cls_w = cls_w.at[0, :, :HIDDEN].set(nrm((HIDDEN, HIDDEN)))          # dense
    cls_w = cls_w.at[1, :, :NUM_LABELS].set(nrm((HIDDEN, NUM_LABELS)))  # out_proj

    return {
        "word_emb": word_emb, "pos_emb": pos_emb,
        "token_type_emb": token_type_emb, "sentence_emb": sentence_emb,
        "attn_w": jnp.stack(attn_w_layers),     # (L, nh, 4, H, H)
        "ffn_w": jnp.stack(ffn_w_layers),       # (L, 2, I, I)
        "vecs": jnp.stack(vec_layers),          # (L, N_VEC, 128)
        "gvecs": gvecs,                         # (4, 128)
        "cls_w": cls_w,                         # (2, H, 128)
    }


# ---------------- forward (Class_Model.forward semantics) ------------------------
@jax.jit
def forward(params, input_ids, attention_mask, token_type_ids, labels=None):
    B, S = input_ids.shape
    H = HIDDEN

    # Class_Model glue: word_embeddings(input_ids) + sentence_embedding(token_type_ids)
    sentence_embeds = params["sentence_emb"][token_type_ids]          # (B,S,H)
    inputs_embeds = params["word_emb"][input_ids] + sentence_embeds   # (B,S,H)

    # RobertaEmbeddings with inputs_embeds: token_type_ids default to 0,
    # position_ids = [pad_idx+1, ..., S+pad_idx]
    position_ids = jnp.arange(PAD_IDX + 1, S + PAD_IDX + 1)
    x = (inputs_embeds
         + params["token_type_emb"][0][None, None, :]
         + params["pos_emb"][position_ids][None, :, :])
    x_emb = x.reshape(B * S, H).astype(jnp.float32)

    # additive attention bias: block-diagonal over batches + key padding mask
    batch_ids = jnp.repeat(jnp.arange(B), S)                          # (B*S,)
    key_valid = attention_mask.reshape(B * S) > 0
    same_batch = batch_ids[:, None] == batch_ids[None, :]
    attn_bias = jnp.where(same_batch & key_valid[None, :], 0.0, -1e9).astype(jnp.float32)

    vmem = pl.BlockSpec(memory_space=pltpu.MemorySpace.VMEM)
    logits_pad = pl.pallas_call(
        _fused_forward_kernel,
        out_shape=jax.ShapeDtypeStruct((B, LOGIT_PAD), jnp.float32),
        in_specs=[vmem] * 7,
        out_specs=vmem,
    )(x_emb, attn_bias,
      params["attn_w"], params["ffn_w"], params["vecs"],
      params["gvecs"], params["cls_w"])

    logits = logits_pad[:, :NUM_LABELS]                               # (B, 3)

    loss = None
    if labels is not None:
        logp = jax.nn.log_softmax(logits, axis=-1)
        loss = -jnp.mean(jnp.take_along_axis(logp, labels[:, None], axis=-1))
    return {"loss": loss, "logits": logits}


# ---------------- run -------------------------------------------------------------
if __name__ == "__main__":
    params = init_params(jax.random.PRNGKey(0))

    input_ids = jax.random.randint(jax.random.PRNGKey(1), (BATCH, SEQ), 2, VOCAB,
                                   dtype=jnp.int32)
    attention_mask = jnp.ones((BATCH, SEQ), dtype=jnp.int32).at[1, SEQ - 2:].set(0)
    token_type_ids = jnp.zeros((BATCH, SEQ), dtype=jnp.int32).at[:, SEQ // 2:].set(1)
    labels = jnp.array([0, 2], dtype=jnp.int32)

    out = forward(params, input_ids, attention_mask, token_type_ids, labels)
    jax.block_until_ready(out["logits"])
    jax.block_until_ready(out["loss"])
    assert out["logits"].shape == (BATCH, NUM_LABELS)
    assert bool(jnp.isfinite(out["loss"]))
    print("KERNEL_OK")
</pallas_src>

<mosaic_0001>
module attributes {stable_mosaic.version = 11 : i64} {
  func.func @_fused_forward_kernel(%arg0: memref<16x32xf32, #tpu.memory_space<vmem>>, %arg1: memref<16x16xf32, #tpu.memory_space<vmem>>, %arg2: memref<2x2x4x32x32xf32, #tpu.memory_space<vmem>>, %arg3: memref<2x2x64x64xf32, #tpu.memory_space<vmem>>, %arg4: memref<2x16x128xf32, #tpu.memory_space<vmem>>, %arg5: memref<4x128xf32, #tpu.memory_space<vmem>>, %arg6: memref<2x32x128xf32, #tpu.memory_space<vmem>>, %arg7: memref<2x128xf32, #tpu.memory_space<vmem>>) attributes {dimension_semantics = [], scalar_prefetch = 0 : i64, scratch_operands = 0 : i64, tpu.core_type = #tpu.core_type<tc>} {
    %c0 = arith.constant 0 : index
    %c0_0 = arith.constant 0 : index
    %0 = vector.load %arg0[%c0, %c0_0] : memref<16x32xf32, #tpu.memory_space<vmem>>, vector<16x32xf32>
    %c0_1 = arith.constant 0 : index
    %c0_2 = arith.constant 0 : index
    %1 = vector.load %arg5[%c0_1, %c0_2] : memref<4x128xf32, #tpu.memory_space<vmem>>, vector<1x128xf32>
    %2 = vector.extract_strided_slice %1 {offsets = [0, 0], sizes = [1, 32], strides = [1, 1]} : vector<1x128xf32> to vector<1x32xf32>
    %c1 = arith.constant 1 : index
    %c0_3 = arith.constant 0 : index
    %3 = vector.load %arg5[%c1, %c0_3] : memref<4x128xf32, #tpu.memory_space<vmem>>, vector<1x128xf32>
    %4 = vector.extract_strided_slice %3 {offsets = [0, 0], sizes = [1, 32], strides = [1, 1]} : vector<1x128xf32> to vector<1x32xf32>
    %cst = arith.constant dense<0.000000e+00> : vector<16xf32>
    %5 = vector.multi_reduction <add>, %0, %cst [1] : vector<16x32xf32> to vector<16xf32>
    %6 = vector.shape_cast %5 : vector<16xf32> to vector<16x1xf32>
    %cst_4 = arith.constant 3.200000e+01 : f32
    %7 = vector.broadcast %cst_4 : f32 to vector<16x1xf32>
    %8 = arith.divf %6, %7 : vector<16x1xf32>
    %9 = vector.broadcast %8 : vector<16x1xf32> to vector<16x32xf32>
    %10 = arith.subf %0, %9 : vector<16x32xf32>
    %11 = arith.mulf %10, %10 : vector<16x32xf32>
    %cst_5 = arith.constant dense<0.000000e+00> : vector<16xf32>
    %12 = vector.multi_reduction <add>, %11, %cst_5 [1] : vector<16x32xf32> to vector<16xf32>
    %13 = vector.shape_cast %12 : vector<16xf32> to vector<16x1xf32>
    %cst_6 = arith.constant 3.200000e+01 : f32
    %14 = vector.broadcast %cst_6 : f32 to vector<16x1xf32>
    %15 = arith.divf %13, %14 : vector<16x1xf32>
    %16 = vector.broadcast %8 : vector<16x1xf32> to vector<16x32xf32>
    %17 = arith.subf %0, %16 : vector<16x32xf32>
    %cst_7 = arith.constant 9.99999974E-6 : f32
    %18 = vector.broadcast %cst_7 : f32 to vector<16x1xf32>
    %19 = arith.addf %15, %18 : vector<16x1xf32>
    %20 = math.rsqrt %19 : vector<16x1xf32>
    %21 = vector.broadcast %20 : vector<16x1xf32> to vector<16x32xf32>
    %22 = arith.mulf %17, %21 : vector<16x32xf32>
    %23 = vector.broadcast %2 : vector<1x32xf32> to vector<16x32xf32>
    %24 = arith.mulf %22, %23 : vector<16x32xf32>
    %25 = vector.broadcast %4 : vector<1x32xf32> to vector<16x32xf32>
    %26 = arith.addf %24, %25 : vector<16x32xf32>
    %c0_8 = arith.constant 0 : index
    %c0_9 = arith.constant 0 : index
    %27 = vector.load %arg1[%c0_8, %c0_9] : memref<16x16xf32, #tpu.memory_space<vmem>>, vector<16x16xf32>
    %c0_10 = arith.constant 0 : index
    %c0_11 = arith.constant 0 : index
    %c0_12 = arith.constant 0 : index
    %c0_13 = arith.constant 0 : index
    %c0_14 = arith.constant 0 : index
    %28 = vector.load %arg2[%c0_10, %c0_11, %c0_12, %c0_13, %c0_14] : memref<2x2x4x32x32xf32, #tpu.memory_space<vmem>>, vector<1x1x1x32x32xf32>
    %29 = vector.shape_cast %28 : vector<1x1x1x32x32xf32> to vector<32x32xf32>
    %c0_15 = arith.constant 0 : index
    %c0_16 = arith.constant 0 : index
    %c1_17 = arith.constant 1 : index
    %c0_18 = arith.constant 0 : index
    %c0_19 = arith.constant 0 : index
    %30 = vector.load %arg2[%c0_15, %c0_16, %c1_17, %c0_18, %c0_19] : memref<2x2x4x32x32xf32, #tpu.memory_space<vmem>>, vector<1x1x1x32x32xf32>
    %31 = vector.shape_cast %30 : vector<1x1x1x32x32xf32> to vector<32x32xf32>
    %c0_20 = arith.constant 0 : index
    %c0_21 = arith.constant 0 : index
    %c2 = arith.constant 2 : index
    %c0_22 = arith.constant 0 : index
    %c0_23 = arith.constant 0 : index
    %32 = vector.load %arg2[%c0_20, %c0_21, %c2, %c0_22, %c0_23] : memref<2x2x4x32x32xf32, #tpu.memory_space<vmem>>, vector<1x1x1x32x32xf32>
    %33 = vector.shape_cast %32 : vector<1x1x1x32x32xf32> to vector<32x32xf32>
    %c0_24 = arith.constant 0 : index
    %c0_25 = arith.constant 0 : index
    %c3 = arith.constant 3 : index
    %c0_26 = arith.constant 0 : index
    %c0_27 = arith.constant 0 : index
    %34 = vector.load %arg2[%c0_24, %c0_25, %c3, %c0_26, %c0_27] : memref<2x2x4x32x32xf32, #tpu.memory_space<vmem>>, vector<1x1x1x32x32xf32>
    %35 = vector.shape_cast %34 : vector<1x1x1x32x32xf32> to vector<32x32xf32>
    %cst_28 = arith.constant dense<0.000000e+00> : vector<16x32xf32>
    %36 = tpu.matmul %26, %29, %cst_28 {dimension_numbers = #tpu.dot_dimension_numbers<[1], [0], [0], [1], [0, 0, 1, 1], [], []>} : vector<16x32xf32>, vector<32x32xf32>, vector<16x32xf32> -> vector<16x32xf32>
    %c0_29 = arith.constant 0 : index
    %c0_30 = arith.constant 0 : index
    %c0_31 = arith.constant 0 : index
    %37 = vector.load %arg4[%c0_29, %c0_30, %c0_31] : memref<2x16x128xf32, #tpu.memory_space<vmem>>, vector<1x1x128xf32>
    %38 = vector.shape_cast %37 : vector<1x1x128xf32> to vector<1x128xf32>
    %39 = vector.extract_strided_slice %38 {offsets = [0, 0], sizes = [1, 32], strides = [1, 1]} : vector<1x128xf32> to vector<1x32xf32>
    %40 = vector.broadcast %39 : vector<1x32xf32> to vector<16x32xf32>
    %41 = arith.addf %36, %40 : vector<16x32xf32>
    %cst_32 = arith.constant dense<0.000000e+00> : vector<16x32xf32>
    %42 = tpu.matmul %26, %31, %cst_32 {dimension_numbers = #tpu.dot_dimension_numbers<[1], [0], [0], [1], [0, 0, 1, 1], [], []>} : vector<16x32xf32>, vector<32x32xf32>, vector<16x32xf32> -> vector<16x32xf32>
    %c0_33 = arith.constant 0 : index
    %c2_34 = arith.constant 2 : index
    %c0_35 = arith.constant 0 : index
    %43 = vector.load %arg4[%c0_33, %c2_34, %c0_35] : memref<2x16x128xf32, #tpu.memory_space<vmem>>, vector<1x1x128xf32>
    %44 = vector.shape_cast %43 : vector<1x1x128xf32> to vector<1x128xf32>
    %45 = vector.extract_strided_slice %44 {offsets = [0, 0], sizes = [1, 32], strides = [1, 1]} : vector<1x128xf32> to vector<1x32xf32>
    %46 = vector.broadcast %45 : vector<1x32xf32> to vector<16x32xf32>
    %47 = arith.addf %42, %46 : vector<16x32xf32>
    %cst_36 = arith.constant dense<0.000000e+00> : vector<16x32xf32>
    %48 = tpu.matmul %26, %33, %cst_36 {dimension_numbers = #tpu.dot_dimension_numbers<[1], [0], [0], [1], [0, 0, 1, 1], [], []>} : vector<16x32xf32>, vector<32x32xf32>, vector<16x32xf32> -> vector<16x32xf32>
    %c0_37 = arith.constant 0 : index
    %c4 = arith.constant 4 : index
    %c0_38 = arith.constant 0 : index
    %49 = vector.load %arg4[%c0_37, %c4, %c0_38] : memref<2x16x128xf32, #tpu.memory_space<vmem>>, vector<1x1x128xf32>
    %50 = vector.shape_cast %49 : vector<1x1x128xf32> to vector<1x128xf32>
    %51 = vector.extract_strided_slice %50 {offsets = [0, 0], sizes = [1, 32], strides = [1, 1]} : vector<1x128xf32> to vector<1x32xf32>
    %52 = vector.broadcast %51 : vector<1x32xf32> to vector<16x32xf32>
    %53 = arith.addf %48, %52 : vector<16x32xf32>
    %cst_39 = arith.constant dense<0.000000e+00> : vector<16x16xf32>
    %54 = tpu.matmul %41, %47, %cst_39 {dimension_numbers = #tpu.dot_dimension_numbers<[1], [1], [0], [0], [0, 0, 1, 0], [], []>} : vector<16x32xf32>, vector<16x32xf32>, vector<16x16xf32> -> vector<16x16xf32>
    %55 = arith.addf %54, %27 : vector<16x16xf32>
    %cst_40 = arith.constant dense<0xFF800000> : vector<16xf32>
    %56 = vector.multi_reduction <maximumf>, %55, %cst_40 [1] : vector<16x16xf32> to vector<16xf32>
    %57 = vector.shape_cast %56 : vector<16xf32> to vector<16x1xf32>
    %58 = vector.broadcast %57 : vector<16x1xf32> to vector<16x16xf32>
    %59 = arith.subf %55, %58 : vector<16x16xf32>
    %60 = math.exp %59 : vector<16x16xf32>
    %cst_41 = arith.constant dense<0.000000e+00> : vector<16xf32>
    %61 = vector.multi_reduction <add>, %60, %cst_41 [1] : vector<16x16xf32> to vector<16xf32>
    %62 = vector.shape_cast %61 : vector<16xf32> to vector<16x1xf32>
    %63 = tpu.reciprocal %62 {approx = true} : vector<16x1xf32> -> vector<16x1xf32>
    %64 = vector.broadcast %63 : vector<16x1xf32> to vector<16x16xf32>
    %65 = arith.mulf %60, %64 : vector<16x16xf32>
    %cst_42 = arith.constant dense<0.000000e+00> : vector<16x32xf32>
    %66 = tpu.matmul %65, %53, %cst_42 {dimension_numbers = #tpu.dot_dimension_numbers<[1], [0], [0], [1], [0, 0, 1, 1], [], []>} : vector<16x16xf32>, vector<16x32xf32>, vector<16x32xf32> -> vector<16x32xf32>
    %cst_43 = arith.constant dense<0.000000e+00> : vector<16x32xf32>
    %67 = tpu.matmul %66, %35, %cst_43 {dimension_numbers = #tpu.dot_dimension_numbers<[1], [0], [0], [1], [0, 0, 1, 1], [], []>} : vector<16x32xf32>, vector<32x32xf32>, vector<16x32xf32> -> vector<16x32xf32>
    %c0_44 = arith.constant 0 : index
    %c1_45 = arith.constant 1 : index
    %c0_46 = arith.constant 0 : index
    %c0_47 = arith.constant 0 : index
    %c0_48 = arith.constant 0 : index
    %68 = vector.load %arg2[%c0_44, %c1_45, %c0_46, %c0_47, %c0_48] : memref<2x2x4x32x32xf32, #tpu.memory_space<vmem>>, vector<1x1x1x32x32xf32>
    %69 = vector.shape_cast %68 : vector<1x1x1x32x32xf32> to vector<32x32xf32>
    %c0_49 = arith.constant 0 : index
    %c1_50 = arith.constant 1 : index
    %c1_51 = arith.constant 1 : index
    %c0_52 = arith.constant 0 : index
    %c0_53 = arith.constant 0 : index
    %70 = vector.load %arg2[%c0_49, %c1_50, %c1_51, %c0_52, %c0_53] : memref<2x2x4x32x32xf32, #tpu.memory_space<vmem>>, vector<1x1x1x32x32xf32>
    %71 = vector.shape_cast %70 : vector<1x1x1x32x32xf32> to vector<32x32xf32>
    %c0_54 = arith.constant 0 : index
    %c1_55 = arith.constant 1 : index
    %c2_56 = arith.constant 2 : index
    %c0_57 = arith.constant 0 : index
    %c0_58 = arith.constant 0 : index
    %72 = vector.load %arg2[%c0_54, %c1_55, %c2_56, %c0_57, %c0_58] : memref<2x2x4x32x32xf32, #tpu.memory_space<vmem>>, vector<1x1x1x32x32xf32>
    %73 = vector.shape_cast %72 : vector<1x1x1x32x32xf32> to vector<32x32xf32>
    %c0_59 = arith.constant 0 : index
    %c1_60 = arith.constant 1 : index
    %c3_61 = arith.constant 3 : index
    %c0_62 = arith.constant 0 : index
    %c0_63 = arith.constant 0 : index
    %74 = vector.load %arg2[%c0_59, %c1_60, %c3_61, %c0_62, %c0_63] : memref<2x2x4x32x32xf32, #tpu.memory_space<vmem>>, vector<1x1x1x32x32xf32>
    %75 = vector.shape_cast %74 : vector<1x1x1x32x32xf32> to vector<32x32xf32>
    %cst_64 = arith.constant dense<0.000000e+00> : vector<16x32xf32>
    %76 = tpu.matmul %26, %69, %cst_64 {dimension_numbers = #tpu.dot_dimension_numbers<[1], [0], [0], [1], [0, 0, 1, 1], [], []>} : vector<16x32xf32>, vector<32x32xf32>, vector<16x32xf32> -> vector<16x32xf32>
    %c0_65 = arith.constant 0 : index
    %c1_66 = arith.constant 1 : index
    %c0_67 = arith.constant 0 : index
    %77 = vector.load %arg4[%c0_65, %c1_66, %c0_67] : memref<2x16x128xf32, #tpu.memory_space<vmem>>, vector<1x1x128xf32>
    %78 = vector.shape_cast %77 : vector<1x1x128xf32> to vector<1x128xf32>
    %79 = vector.extract_strided_slice %78 {offsets = [0, 0], sizes = [1, 32], strides = [1, 1]} : vector<1x128xf32> to vector<1x32xf32>
    %80 = vector.broadcast %79 : vector<1x32xf32> to vector<16x32xf32>
    %81 = arith.addf %76, %80 : vector<16x32xf32>
    %cst_68 = arith.constant dense<0.000000e+00> : vector<16x32xf32>
    %82 = tpu.matmul %26, %71, %cst_68 {dimension_numbers = #tpu.dot_dimension_numbers<[1], [0], [0], [1], [0, 0, 1, 1], [], []>} : vector<16x32xf32>, vector<32x32xf32>, vector<16x32xf32> -> vector<16x32xf32>
    %c0_69 = arith.constant 0 : index
    %c3_70 = arith.constant 3 : index
    %c0_71 = arith.constant 0 : index
    %83 = vector.load %arg4[%c0_69, %c3_70, %c0_71] : memref<2x16x128xf32, #tpu.memory_space<vmem>>, vector<1x1x128xf32>
    %84 = vector.shape_cast %83 : vector<1x1x128xf32> to vector<1x128xf32>
    %85 = vector.extract_strided_slice %84 {offsets = [0, 0], sizes = [1, 32], strides = [1, 1]} : vector<1x128xf32> to vector<1x32xf32>
    %86 = vector.broadcast %85 : vector<1x32xf32> to vector<16x32xf32>
    %87 = arith.addf %82, %86 : vector<16x32xf32>
    %cst_72 = arith.constant dense<0.000000e+00> : vector<16x32xf32>
    %88 = tpu.matmul %26, %73, %cst_72 {dimension_numbers = #tpu.dot_dimension_numbers<[1], [0], [0], [1], [0, 0, 1, 1], [], []>} : vector<16x32xf32>, vector<32x32xf32>, vector<16x32xf32> -> vector<16x32xf32>
    %c0_73 = arith.constant 0 : index
    %c5 = arith.constant 5 : index
    %c0_74 = arith.constant 0 : index
    %89 = vector.load %arg4[%c0_73, %c5, %c0_74] : memref<2x16x128xf32, #tpu.memory_space<vmem>>, vector<1x1x128xf32>
    %90 = vector.shape_cast %89 : vector<1x1x128xf32> to vector<1x128xf32>
    %91 = vector.extract_strided_slice %90 {offsets = [0, 0], sizes = [1, 32], strides = [1, 1]} : vector<1x128xf32> to vector<1x32xf32>
    %92 = vector.broadcast %91 : vector<1x32xf32> to vector<16x32xf32>
    %93 = arith.addf %88, %92 : vector<16x32xf32>
    %cst_75 = arith.constant dense<0.000000e+00> : vector<16x16xf32>
    %94 = tpu.matmul %81, %87, %cst_75 {dimension_numbers = #tpu.dot_dimension_numbers<[1], [1], [0], [0], [0, 0, 1, 0], [], []>} : vector<16x32xf32>, vector<16x32xf32>, vector<16x16xf32> -> vector<16x16xf32>
    %95 = arith.addf %94, %27 : vector<16x16xf32>
    %cst_76 = arith.constant dense<0xFF800000> : vector<16xf32>
    %96 = vector.multi_reduction <maximumf>, %95, %cst_76 [1] : vector<16x16xf32> to vector<16xf32>
    %97 = vector.shape_cast %96 : vector<16xf32> to vector<16x1xf32>
    %98 = vector.broadcast %97 : vector<16x1xf32> to vector<16x16xf32>
    %99 = arith.subf %95, %98 : vector<16x16xf32>
    %100 = math.exp %99 : vector<16x16xf32>
    %cst_77 = arith.constant dense<0.000000e+00> : vector<16xf32>
    %101 = vector.multi_reduction <add>, %100, %cst_77 [1] : vector<16x16xf32> to vector<16xf32>
    %102 = vector.shape_cast %101 : vector<16xf32> to vector<16x1xf32>
    %103 = tpu.reciprocal %102 {approx = true} : vector<16x1xf32> -> vector<16x1xf32>
    %104 = vector.broadcast %103 : vector<16x1xf32> to vector<16x16xf32>
    %105 = arith.mulf %100, %104 : vector<16x16xf32>
    %cst_78 = arith.constant dense<0.000000e+00> : vector<16x32xf32>
    %106 = tpu.matmul %105, %93, %cst_78 {dimension_numbers = #tpu.dot_dimension_numbers<[1], [0], [0], [1], [0, 0, 1, 1], [], []>} : vector<16x16xf32>, vector<16x32xf32>, vector<16x32xf32> -> vector<16x32xf32>
    %cst_79 = arith.constant dense<0.000000e+00> : vector<16x32xf32>
    %107 = tpu.matmul %106, %75, %cst_79 {dimension_numbers = #tpu.dot_dimension_numbers<[1], [0], [0], [1], [0, 0, 1, 1], [], []>} : vector<16x32xf32>, vector<32x32xf32>, vector<16x32xf32> -> vector<16x32xf32>
    %108 = arith.addf %67, %107 : vector<16x32xf32>
    %c0_80 = arith.constant 0 : index
    %c6 = arith.constant 6 : index
    %c0_81 = arith.constant 0 : index
    %109 = vector.load %arg4[%c0_80, %c6, %c0_81] : memref<2x16x128xf32, #tpu.memory_space<vmem>>, vector<1x1x128xf32>
    %110 = vector.shape_cast %109 : vector<1x1x128xf32> to vector<1x128xf32>
    %111 = vector.extract_strided_slice %110 {offsets = [0, 0], sizes = [1, 32], strides = [1, 1]} : vector<1x128xf32> to vector<1x32xf32>
    %112 = vector.broadcast %111 : vector<1x32xf32> to vector<16x32xf32>
    %113 = arith.addf %108, %112 : vector<16x32xf32>
    %114 = arith.addf %113, %26 : vector<16x32xf32>
    %c0_82 = arith.constant 0 : index
    %c7 = arith.constant 7 : index
    %c0_83 = arith.constant 0 : index
    %115 = vector.load %arg4[%c0_82, %c7, %c0_83] : memref<2x16x128xf32, #tpu.memory_space<vmem>>, vector<1x1x128xf32>
    %116 = vector.shape_cast %115 : vector<1x1x128xf32> to vector<1x128xf32>
    %117 = vector.extract_strided_slice %116 {offsets = [0, 0], sizes = [1, 32], strides = [1, 1]} : vector<1x128xf32> to vector<1x32xf32>
    %c0_84 = arith.constant 0 : index
    %c8 = arith.constant 8 : index
    %c0_85 = arith.constant 0 : index
    %118 = vector.load %arg4[%c0_84, %c8, %c0_85] : memref<2x16x128xf32, #tpu.memory_space<vmem>>, vector<1x1x128xf32>
    %119 = vector.shape_cast %118 : vector<1x1x128xf32> to vector<1x128xf32>
    %120 = vector.extract_strided_slice %119 {offsets = [0, 0], sizes = [1, 32], strides = [1, 1]} : vector<1x128xf32> to vector<1x32xf32>
    %cst_86 = arith.constant dense<0.000000e+00> : vector<16xf32>
    %121 = vector.multi_reduction <add>, %114, %cst_86 [1] : vector<16x32xf32> to vector<16xf32>
    %122 = vector.shape_cast %121 : vector<16xf32> to vector<16x1xf32>
    %cst_87 = arith.constant 3.200000e+01 : f32
    %123 = vector.broadcast %cst_87 : f32 to vector<16x1xf32>
    %124 = arith.divf %122, %123 : vector<16x1xf32>
    %125 = vector.broadcast %124 : vector<16x1xf32> to vector<16x32xf32>
    %126 = arith.subf %114, %125 : vector<16x32xf32>
    %127 = arith.mulf %126, %126 : vector<16x32xf32>
    %cst_88 = arith.constant dense<0.000000e+00> : vector<16xf32>
    %128 = vector.multi_reduction <add>, %127, %cst_88 [1] : vector<16x32xf32> to vector<16xf32>
    %129 = vector.shape_cast %128 : vector<16xf32> to vector<16x1xf32>
    %cst_89 = arith.constant 3.200000e+01 : f32
    %130 = vector.broadcast %cst_89 : f32 to vector<16x1xf32>
    %131 = arith.divf %129, %130 : vector<16x1xf32>
    %132 = vector.broadcast %124 : vector<16x1xf32> to vector<16x32xf32>
    %133 = arith.subf %114, %132 : vector<16x32xf32>
    %cst_90 = arith.constant 9.99999974E-6 : f32
    %134 = vector.broadcast %cst_90 : f32 to vector<16x1xf32>
    %135 = arith.addf %131, %134 : vector<16x1xf32>
    %136 = math.rsqrt %135 : vector<16x1xf32>
    %137 = vector.broadcast %136 : vector<16x1xf32> to vector<16x32xf32>
    %138 = arith.mulf %133, %137 : vector<16x32xf32>
    %139 = vector.broadcast %117 : vector<1x32xf32> to vector<16x32xf32>
    %140 = arith.mulf %138, %139 : vector<16x32xf32>
    %141 = vector.broadcast %120 : vector<1x32xf32> to vector<16x32xf32>
    %142 = arith.addf %140, %141 : vector<16x32xf32>
    %c0_91 = arith.constant 0 : index
    %c0_92 = arith.constant 0 : index
    %c0_93 = arith.constant 0 : index
    %c0_94 = arith.constant 0 : index
    %143 = vector.load %arg3[%c0_91, %c0_92, %c0_93, %c0_94] : memref<2x2x64x64xf32, #tpu.memory_space<vmem>>, vector<1x1x64x64xf32>
    %144 = vector.shape_cast %143 : vector<1x1x64x64xf32> to vector<64x64xf32>
    %145 = vector.extract_strided_slice %144 {offsets = [0, 0], sizes = [32, 64], strides = [1, 1]} : vector<64x64xf32> to vector<32x64xf32>
    %c0_95 = arith.constant 0 : index
    %c1_96 = arith.constant 1 : index
    %c0_97 = arith.constant 0 : index
    %c0_98 = arith.constant 0 : index
    %146 = vector.load %arg3[%c0_95, %c1_96, %c0_97, %c0_98] : memref<2x2x64x64xf32, #tpu.memory_space<vmem>>, vector<1x1x64x64xf32>
    %147 = vector.shape_cast %146 : vector<1x1x64x64xf32> to vector<64x64xf32>
    %148 = vector.extract_strided_slice %147 {offsets = [0, 0], sizes = [64, 32], strides = [1, 1]} : vector<64x64xf32> to vector<64x32xf32>
    %cst_99 = arith.constant dense<0.000000e+00> : vector<16x64xf32>
    %149 = tpu.matmul %142, %145, %cst_99 {dimension_numbers = #tpu.dot_dimension_numbers<[1], [0], [0], [1], [0, 0, 1, 1], [], []>} : vector<16x32xf32>, vector<32x64xf32>, vector<16x64xf32> -> vector<16x64xf32>
    %c0_100 = arith.constant 0 : index
    %c9 = arith.constant 9 : index
    %c0_101 = arith.constant 0 : index
    %150 = vector.load %arg4[%c0_100, %c9, %c0_101] : memref<2x16x128xf32, #tpu.memory_space<vmem>>, vector<1x1x128xf32>
    %151 = vector.shape_cast %150 : vector<1x1x128xf32> to vector<1x128xf32>
    %152 = vector.extract_strided_slice %151 {offsets = [0, 0], sizes = [1, 64], strides = [1, 1]} : vector<1x128xf32> to vector<1x64xf32>
    %153 = vector.broadcast %152 : vector<1x64xf32> to vector<16x64xf32>
    %154 = arith.addf %149, %153 : vector<16x64xf32>
    %cst_102 = arith.constant 5.000000e-01 : f32
    %155 = vector.broadcast %cst_102 : f32 to vector<16x64xf32>
    %156 = arith.mulf %155, %154 : vector<16x64xf32>
    %cst_103 = arith.constant 4.471500e-02 : f32
    %157 = vector.broadcast %cst_103 : f32 to vector<16x64xf32>
    %158 = arith.mulf %157, %154 : vector<16x64xf32>
    %159 = arith.mulf %158, %154 : vector<16x64xf32>
    %160 = arith.mulf %159, %154 : vector<16x64xf32>
    %161 = arith.addf %154, %160 : vector<16x64xf32>
    %cst_104 = arith.constant 0.797884583 : f32
    %162 = vector.broadcast %cst_104 : f32 to vector<16x64xf32>
    %163 = arith.mulf %162, %161 : vector<16x64xf32>
    %164 = math.tanh %163 : vector<16x64xf32>
    %cst_105 = arith.constant 1.000000e+00 : f32
    %165 = vector.broadcast %cst_105 : f32 to vector<16x64xf32>
    %166 = arith.addf %165, %164 : vector<16x64xf32>
    %167 = arith.mulf %156, %166 : vector<16x64xf32>
    %cst_106 = arith.constant dense<0.000000e+00> : vector<16x32xf32>
    %168 = tpu.matmul %167, %148, %cst_106 {dimension_numbers = #tpu.dot_dimension_numbers<[1], [0], [0], [1], [0, 0, 1, 1], [], []>} : vector<16x64xf32>, vector<64x32xf32>, vector<16x32xf32> -> vector<16x32xf32>
    %c0_107 = arith.constant 0 : index
    %c10 = arith.constant 10 : index
    %c0_108 = arith.constant 0 : index
    %169 = vector.load %arg4[%c0_107, %c10, %c0_108] : memref<2x16x128xf32, #tpu.memory_space<vmem>>, vector<1x1x128xf32>
    %170 = vector.shape_cast %169 : vector<1x1x128xf32> to vector<1x128xf32>
    %171 = vector.extract_strided_slice %170 {offsets = [0, 0], sizes = [1, 32], strides = [1, 1]} : vector<1x128xf32> to vector<1x32xf32>
    %172 = vector.broadcast %171 : vector<1x32xf32> to vector<16x32xf32>
    %173 = arith.addf %168, %172 : vector<16x32xf32>
    %174 = arith.addf %173, %142 : vector<16x32xf32>
    %c0_109 = arith.constant 0 : index
    %c11 = arith.constant 11 : index
    %c0_110 = arith.constant 0 : index
    %175 = vector.load %arg4[%c0_109, %c11, %c0_110] : memref<2x16x128xf32, #tpu.memory_space<vmem>>, vector<1x1x128xf32>
    %176 = vector.shape_cast %175 : vector<1x1x128xf32> to vector<1x128xf32>
    %177 = vector.extract_strided_slice %176 {offsets = [0, 0], sizes = [1, 32], strides = [1, 1]} : vector<1x128xf32> to vector<1x32xf32>
    %c0_111 = arith.constant 0 : index
    %c12 = arith.constant 12 : index
    %c0_112 = arith.constant 0 : index
    %178 = vector.load %arg4[%c0_111, %c12, %c0_112] : memref<2x16x128xf32, #tpu.memory_space<vmem>>, vector<1x1x128xf32>
    %179 = vector.shape_cast %178 : vector<1x1x128xf32> to vector<1x128xf32>
    %180 = vector.extract_strided_slice %179 {offsets = [0, 0], sizes = [1, 32], strides = [1, 1]} : vector<1x128xf32> to vector<1x32xf32>
    %cst_113 = arith.constant dense<0.000000e+00> : vector<16xf32>
    %181 = vector.multi_reduction <add>, %174, %cst_113 [1] : vector<16x32xf32> to vector<16xf32>
    %182 = vector.shape_cast %181 : vector<16xf32> to vector<16x1xf32>
    %cst_114 = arith.constant 3.200000e+01 : f32
    %183 = vector.broadcast %cst_114 : f32 to vector<16x1xf32>
    %184 = arith.divf %182, %183 : vector<16x1xf32>
    %185 = vector.broadcast %184 : vector<16x1xf32> to vector<16x32xf32>
    %186 = arith.subf %174, %185 : vector<16x32xf32>
    %187 = arith.mulf %186, %186 : vector<16x32xf32>
    %cst_115 = arith.constant dense<0.000000e+00> : vector<16xf32>
    %188 = vector.multi_reduction <add>, %187, %cst_115 [1] : vector<16x32xf32> to vector<16xf32>
    %189 = vector.shape_cast %188 : vector<16xf32> to vector<16x1xf32>
    %cst_116 = arith.constant 3.200000e+01 : f32
    %190 = vector.broadcast %cst_116 : f32 to vector<16x1xf32>
    %191 = arith.divf %189, %190 : vector<16x1xf32>
    %192 = vector.broadcast %184 : vector<16x1xf32> to vector<16x32xf32>
    %193 = arith.subf %174, %192 : vector<16x32xf32>
    %cst_117 = arith.constant 9.99999974E-6 : f32
    %194 = vector.broadcast %cst_117 : f32 to vector<16x1xf32>
    %195 = arith.addf %191, %194 : vector<16x1xf32>
    %196 = math.rsqrt %195 : vector<16x1xf32>
    %197 = vector.broadcast %196 : vector<16x1xf32> to vector<16x32xf32>
    %198 = arith.mulf %193, %197 : vector<16x32xf32>
    %199 = vector.broadcast %177 : vector<1x32xf32> to vector<16x32xf32>
    %200 = arith.mulf %198, %199 : vector<16x32xf32>
    %201 = vector.broadcast %180 : vector<1x32xf32> to vector<16x32xf32>
    %202 = arith.addf %200, %201 : vector<16x32xf32>
    %c1_118 = arith.constant 1 : index
    %c0_119 = arith.constant 0 : index
    %c0_120 = arith.constant 0 : index
    %c0_121 = arith.constant 0 : index
    %c0_122 = arith.constant 0 : index
    %203 = vector.load %arg2[%c1_118, %c0_119, %c0_120, %c0_121, %c0_122] : memref<2x2x4x32x32xf32, #tpu.memory_space<vmem>>, vector<1x1x1x32x32xf32>
    %204 = vector.shape_cast %203 : vector<1x1x1x32x32xf32> to vector<32x32xf32>
    %c1_123 = arith.constant 1 : index
    %c0_124 = arith.constant 0 : index
    %c1_125 = arith.constant 1 : index
    %c0_126 = arith.constant 0 : index
    %c0_127 = arith.constant 0 : index
    %205 = vector.load %arg2[%c1_123, %c0_124, %c1_125, %c0_126, %c0_127] : memref<2x2x4x32x32xf32, #tpu.memory_space<vmem>>, vector<1x1x1x32x32xf32>
    %206 = vector.shape_cast %205 : vector<1x1x1x32x32xf32> to vector<32x32xf32>
    %c1_128 = arith.constant 1 : index
    %c0_129 = arith.constant 0 : index
    %c2_130 = arith.constant 2 : index
    %c0_131 = arith.constant 0 : index
    %c0_132 = arith.constant 0 : index
    %207 = vector.load %arg2[%c1_128, %c0_129, %c2_130, %c0_131, %c0_132] : memref<2x2x4x32x32xf32, #tpu.memory_space<vmem>>, vector<1x1x1x32x32xf32>
    %208 = vector.shape_cast %207 : vector<1x1x1x32x32xf32> to vector<32x32xf32>
    %c1_133 = arith.constant 1 : index
    %c0_134 = arith.constant 0 : index
    %c3_135 = arith.constant 3 : index
    %c0_136 = arith.constant 0 : index
    %c0_137 = arith.constant 0 : index
    %209 = vector.load %arg2[%c1_133, %c0_134, %c3_135, %c0_136, %c0_137] : memref<2x2x4x32x32xf32, #tpu.memory_space<vmem>>, vector<1x1x1x32x32xf32>
    %210 = vector.shape_cast %209 : vector<1x1x1x32x32xf32> to vector<32x32xf32>
    %cst_138 = arith.constant dense<0.000000e+00> : vector<16x32xf32>
    %211 = tpu.matmul %202, %204, %cst_138 {dimension_numbers = #tpu.dot_dimension_numbers<[1], [0], [0], [1], [0, 0, 1, 1], [], []>} : vector<16x32xf32>, vector<32x32xf32>, vector<16x32xf32> -> vector<16x32xf32>
    %c1_139 = arith.constant 1 : index
    %c0_140 = arith.constant 0 : index
    %c0_141 = arith.constant 0 : index
    %212 = vector.load %arg4[%c1_139, %c0_140, %c0_141] : memref<2x16x128xf32, #tpu.memory_space<vmem>>, vector<1x1x128xf32>
    %213 = vector.shape_cast %212 : vector<1x1x128xf32> to vector<1x128xf32>
    %214 = vector.extract_strided_slice %213 {offsets = [0, 0], sizes = [1, 32], strides = [1, 1]} : vector<1x128xf32> to vector<1x32xf32>
    %215 = vector.broadcast %214 : vector<1x32xf32> to vector<16x32xf32>
    %216 = arith.addf %211, %215 : vector<16x32xf32>
    %cst_142 = arith.constant dense<0.000000e+00> : vector<16x32xf32>
    %217 = tpu.matmul %202, %206, %cst_142 {dimension_numbers = #tpu.dot_dimension_numbers<[1], [0], [0], [1], [0, 0, 1, 1], [], []>} : vector<16x32xf32>, vector<32x32xf32>, vector<16x32xf32> -> vector<16x32xf32>
    %c1_143 = arith.constant 1 : index
    %c2_144 = arith.constant 2 : index
    %c0_145 = arith.constant 0 : index
    %218 = vector.load %arg4[%c1_143, %c2_144, %c0_145] : memref<2x16x128xf32, #tpu.memory_space<vmem>>, vector<1x1x128xf32>
    %219 = vector.shape_cast %218 : vector<1x1x128xf32> to vector<1x128xf32>
    %220 = vector.extract_strided_slice %219 {offsets = [0, 0], sizes = [1, 32], strides = [1, 1]} : vector<1x128xf32> to vector<1x32xf32>
    %221 = vector.broadcast %220 : vector<1x32xf32> to vector<16x32xf32>
    %222 = arith.addf %217, %221 : vector<16x32xf32>
    %cst_146 = arith.constant dense<0.000000e+00> : vector<16x32xf32>
    %223 = tpu.matmul %202, %208, %cst_146 {dimension_numbers = #tpu.dot_dimension_numbers<[1], [0], [0], [1], [0, 0, 1, 1], [], []>} : vector<16x32xf32>, vector<32x32xf32>, vector<16x32xf32> -> vector<16x32xf32>
    %c1_147 = arith.constant 1 : index
    %c4_148 = arith.constant 4 : index
    %c0_149 = arith.constant 0 : index
    %224 = vector.load %arg4[%c1_147, %c4_148, %c0_149] : memref<2x16x128xf32, #tpu.memory_space<vmem>>, vector<1x1x128xf32>
    %225 = vector.shape_cast %224 : vector<1x1x128xf32> to vector<1x128xf32>
    %226 = vector.extract_strided_slice %225 {offsets = [0, 0], sizes = [1, 32], strides = [1, 1]} : vector<1x128xf32> to vector<1x32xf32>
    %227 = vector.broadcast %226 : vector<1x32xf32> to vector<16x32xf32>
    %228 = arith.addf %223, %227 : vector<16x32xf32>
    %cst_150 = arith.constant dense<0.000000e+00> : vector<16x16xf32>
    %229 = tpu.matmul %216, %222, %cst_150 {dimension_numbers = #tpu.dot_dimension_numbers<[1], [1], [0], [0], [0, 0, 1, 0], [], []>} : vector<16x32xf32>, vector<16x32xf32>, vector<16x16xf32> -> vector<16x16xf32>
    %230 = arith.addf %229, %27 : vector<16x16xf32>
    %cst_151 = arith.constant dense<0xFF800000> : vector<16xf32>
    %231 = vector.multi_reduction <maximumf>, %230, %cst_151 [1] : vector<16x16xf32> to vector<16xf32>
    %232 = vector.shape_cast %231 : vector<16xf32> to vector<16x1xf32>
    %233 = vector.broadcast %232 : vector<16x1xf32> to vector<16x16xf32>
    %234 = arith.subf %230, %233 : vector<16x16xf32>
    %235 = math.exp %234 : vector<16x16xf32>
    %cst_152 = arith.constant dense<0.000000e+00> : vector<16xf32>
    %236 = vector.multi_reduction <add>, %235, %cst_152 [1] : vector<16x16xf32> to vector<16xf32>
    %237 = vector.shape_cast %236 : vector<16xf32> to vector<16x1xf32>
    %238 = tpu.reciprocal %237 {approx = true} : vector<16x1xf32> -> vector<16x1xf32>
    %239 = vector.broadcast %238 : vector<16x1xf32> to vector<16x16xf32>
    %240 = arith.mulf %235, %239 : vector<16x16xf32>
    %cst_153 = arith.constant dense<0.000000e+00> : vector<16x32xf32>
    %241 = tpu.matmul %240, %228, %cst_153 {dimension_numbers = #tpu.dot_dimension_numbers<[1], [0], [0], [1], [0, 0, 1, 1], [], []>} : vector<16x16xf32>, vector<16x32xf32>, vector<16x32xf32> -> vector<16x32xf32>
    %cst_154 = arith.constant dense<0.000000e+00> : vector<16x32xf32>
    %242 = tpu.matmul %241, %210, %cst_154 {dimension_numbers = #tpu.dot_dimension_numbers<[1], [0], [0], [1], [0, 0, 1, 1], [], []>} : vector<16x32xf32>, vector<32x32xf32>, vector<16x32xf32> -> vector<16x32xf32>
    %c1_155 = arith.constant 1 : index
    %c1_156 = arith.constant 1 : index
    %c0_157 = arith.constant 0 : index
    %c0_158 = arith.constant 0 : index
    %c0_159 = arith.constant 0 : index
    %243 = vector.load %arg2[%c1_155, %c1_156, %c0_157, %c0_158, %c0_159] : memref<2x2x4x32x32xf32, #tpu.memory_space<vmem>>, vector<1x1x1x32x32xf32>
    %244 = vector.shape_cast %243 : vector<1x1x1x32x32xf32> to vector<32x32xf32>
    %c1_160 = arith.constant 1 : index
    %c1_161 = arith.constant 1 : index
    %c1_162 = arith.constant 1 : index
    %c0_163 = arith.constant 0 : index
    %c0_164 = arith.constant 0 : index
    %245 = vector.load %arg2[%c1_160, %c1_161, %c1_162, %c0_163, %c0_164] : memref<2x2x4x32x32xf32, #tpu.memory_space<vmem>>, vector<1x1x1x32x32xf32>
    %246 = vector.shape_cast %245 : vector<1x1x1x32x32xf32> to vector<32x32xf32>
    %c1_165 = arith.constant 1 : index
    %c1_166 = arith.constant 1 : index
    %c2_167 = arith.constant 2 : index
    %c0_168 = arith.constant 0 : index
    %c0_169 = arith.constant 0 : index
    %247 = vector.load %arg2[%c1_165, %c1_166, %c2_167, %c0_168, %c0_169] : memref<2x2x4x32x32xf32, #tpu.memory_space<vmem>>, vector<1x1x1x32x32xf32>
    %248 = vector.shape_cast %247 : vector<1x1x1x32x32xf32> to vector<32x32xf32>
    %c1_170 = arith.constant 1 : index
    %c1_171 = arith.constant 1 : index
    %c3_172 = arith.constant 3 : index
    %c0_173 = arith.constant 0 : index
    %c0_174 = arith.constant 0 : index
    %249 = vector.load %arg2[%c1_170, %c1_171, %c3_172, %c0_173, %c0_174] : memref<2x2x4x32x32xf32, #tpu.memory_space<vmem>>, vector<1x1x1x32x32xf32>
    %250 = vector.shape_cast %249 : vector<1x1x1x32x32xf32> to vector<32x32xf32>
    %cst_175 = arith.constant dense<0.000000e+00> : vector<16x32xf32>
    %251 = tpu.matmul %202, %244, %cst_175 {dimension_numbers = #tpu.dot_dimension_numbers<[1], [0], [0], [1], [0, 0, 1, 1], [], []>} : vector<16x32xf32>, vector<32x32xf32>, vector<16x32xf32> -> vector<16x32xf32>
    %c1_176 = arith.constant 1 : index
    %c1_177 = arith.constant 1 : index
    %c0_178 = arith.constant 0 : index
    %252 = vector.load %arg4[%c1_176, %c1_177, %c0_178] : memref<2x16x128xf32, #tpu.memory_space<vmem>>, vector<1x1x128xf32>
    %253 = vector.shape_cast %252 : vector<1x1x128xf32> to vector<1x128xf32>
    %254 = vector.extract_strided_slice %253 {offsets = [0, 0], sizes = [1, 32], strides = [1, 1]} : vector<1x128xf32> to vector<1x32xf32>
    %255 = vector.broadcast %254 : vector<1x32xf32> to vector<16x32xf32>
    %256 = arith.addf %251, %255 : vector<16x32xf32>
    %cst_179 = arith.constant dense<0.000000e+00> : vector<16x32xf32>
    %257 = tpu.matmul %202, %246, %cst_179 {dimension_numbers = #tpu.dot_dimension_numbers<[1], [0], [0], [1], [0, 0, 1, 1], [], []>} : vector<16x32xf32>, vector<32x32xf32>, vector<16x32xf32> -> vector<16x32xf32>
    %c1_180 = arith.constant 1 : index
    %c3_181 = arith.constant 3 : index
    %c0_182 = arith.constant 0 : index
    %258 = vector.load %arg4[%c1_180, %c3_181, %c0_182] : memref<2x16x128xf32, #tpu.memory_space<vmem>>, vector<1x1x128xf32>
    %259 = vector.shape_cast %258 : vector<1x1x128xf32> to vector<1x128xf32>
    %260 = vector.extract_strided_slice %259 {offsets = [0, 0], sizes = [1, 32], strides = [1, 1]} : vector<1x128xf32> to vector<1x32xf32>
    %261 = vector.broadcast %260 : vector<1x32xf32> to vector<16x32xf32>
    %262 = arith.addf %257, %261 : vector<16x32xf32>
    %cst_183 = arith.constant dense<0.000000e+00> : vector<16x32xf32>
    %263 = tpu.matmul %202, %248, %cst_183 {dimension_numbers = #tpu.dot_dimension_numbers<[1], [0], [0], [1], [0, 0, 1, 1], [], []>} : vector<16x32xf32>, vector<32x32xf32>, vector<16x32xf32> -> vector<16x32xf32>
    %c1_184 = arith.constant 1 : index
    %c5_185 = arith.constant 5 : index
    %c0_186 = arith.constant 0 : index
    %264 = vector.load %arg4[%c1_184, %c5_185, %c0_186] : memref<2x16x128xf32, #tpu.memory_space<vmem>>, vector<1x1x128xf32>
    %265 = vector.shape_cast %264 : vector<1x1x128xf32> to vector<1x128xf32>
    %266 = vector.extract_strided_slice %265 {offsets = [0, 0], sizes = [1, 32], strides = [1, 1]} : vector<1x128xf32> to vector<1x32xf32>
    %267 = vector.broadcast %266 : vector<1x32xf32> to vector<16x32xf32>
    %268 = arith.addf %263, %267 : vector<16x32xf32>
    %cst_187 = arith.constant dense<0.000000e+00> : vector<16x16xf32>
    %269 = tpu.matmul %256, %262, %cst_187 {dimension_numbers = #tpu.dot_dimension_numbers<[1], [1], [0], [0], [0, 0, 1, 0], [], []>} : vector<16x32xf32>, vector<16x32xf32>, vector<16x16xf32> -> vector<16x16xf32>
    %270 = arith.addf %269, %27 : vector<16x16xf32>
    %cst_188 = arith.constant dense<0xFF800000> : vector<16xf32>
    %271 = vector.multi_reduction <maximumf>, %270, %cst_188 [1] : vector<16x16xf32> to vector<16xf32>
    %272 = vector.shape_cast %271 : vector<16xf32> to vector<16x1xf32>
    %273 = vector.broadcast %272 : vector<16x1xf32> to vector<16x16xf32>
    %274 = arith.subf %270, %273 : vector<16x16xf32>
    %275 = math.exp %274 : vector<16x16xf32>
    %cst_189 = arith.constant dense<0.000000e+00> : vector<16xf32>
    %276 = vector.multi_reduction <add>, %275, %cst_189 [1] : vector<16x16xf32> to vector<16xf32>
    %277 = vector.shape_cast %276 : vector<16xf32> to vector<16x1xf32>
    %278 = tpu.reciprocal %277 {approx = true} : vector<16x1xf32> -> vector<16x1xf32>
    %279 = vector.broadcast %278 : vector<16x1xf32> to vector<16x16xf32>
    %280 = arith.mulf %275, %279 : vector<16x16xf32>
    %cst_190 = arith.constant dense<0.000000e+00> : vector<16x32xf32>
    %281 = tpu.matmul %280, %268, %cst_190 {dimension_numbers = #tpu.dot_dimension_numbers<[1], [0], [0], [1], [0, 0, 1, 1], [], []>} : vector<16x16xf32>, vector<16x32xf32>, vector<16x32xf32> -> vector<16x32xf32>
    %cst_191 = arith.constant dense<0.000000e+00> : vector<16x32xf32>
    %282 = tpu.matmul %281, %250, %cst_191 {dimension_numbers = #tpu.dot_dimension_numbers<[1], [0], [0], [1], [0, 0, 1, 1], [], []>} : vector<16x32xf32>, vector<32x32xf32>, vector<16x32xf32> -> vector<16x32xf32>
    %283 = arith.addf %242, %282 : vector<16x32xf32>
    %c1_192 = arith.constant 1 : index
    %c6_193 = arith.constant 6 : index
    %c0_194 = arith.constant 0 : index
    %284 = vector.load %arg4[%c1_192, %c6_193, %c0_194] : memref<2x16x128xf32, #tpu.memory_space<vmem>>, vector<1x1x128xf32>
    %285 = vector.shape_cast %284 : vector<1x1x128xf32> to vector<1x128xf32>
    %286 = vector.extract_strided_slice %285 {offsets = [0, 0], sizes = [1, 32], strides = [1, 1]} : vector<1x128xf32> to vector<1x32xf32>
    %287 = vector.broadcast %286 : vector<1x32xf32> to vector<16x32xf32>
    %288 = arith.addf %283, %287 : vector<16x32xf32>
    %289 = arith.addf %288, %202 : vector<16x32xf32>
    %c1_195 = arith.constant 1 : index
    %c7_196 = arith.constant 7 : index
    %c0_197 = arith.constant 0 : index
    %290 = vector.load %arg4[%c1_195, %c7_196, %c0_197] : memref<2x16x128xf32, #tpu.memory_space<vmem>>, vector<1x1x128xf32>
    %291 = vector.shape_cast %290 : vector<1x1x128xf32> to vector<1x128xf32>
    %292 = vector.extract_strided_slice %291 {offsets = [0, 0], sizes = [1, 32], strides = [1, 1]} : vector<1x128xf32> to vector<1x32xf32>
    %c1_198 = arith.constant 1 : index
    %c8_199 = arith.constant 8 : index
    %c0_200 = arith.constant 0 : index
    %293 = vector.load %arg4[%c1_198, %c8_199, %c0_200] : memref<2x16x128xf32, #tpu.memory_space<vmem>>, vector<1x1x128xf32>
    %294 = vector.shape_cast %293 : vector<1x1x128xf32> to vector<1x128xf32>
    %295 = vector.extract_strided_slice %294 {offsets = [0, 0], sizes = [1, 32], strides = [1, 1]} : vector<1x128xf32> to vector<1x32xf32>
    %cst_201 = arith.constant dense<0.000000e+00> : vector<16xf32>
    %296 = vector.multi_reduction <add>, %289, %cst_201 [1] : vector<16x32xf32> to vector<16xf32>
    %297 = vector.shape_cast %296 : vector<16xf32> to vector<16x1xf32>
    %cst_202 = arith.constant 3.200000e+01 : f32
    %298 = vector.broadcast %cst_202 : f32 to vector<16x1xf32>
    %299 = arith.divf %297, %298 : vector<16x1xf32>
    %300 = vector.broadcast %299 : vector<16x1xf32> to vector<16x32xf32>
    %301 = arith.subf %289, %300 : vector<16x32xf32>
    %302 = arith.mulf %301, %301 : vector<16x32xf32>
    %cst_203 = arith.constant dense<0.000000e+00> : vector<16xf32>
    %303 = vector.multi_reduction <add>, %302, %cst_203 [1] : vector<16x32xf32> to vector<16xf32>
    %304 = vector.shape_cast %303 : vector<16xf32> to vector<16x1xf32>
    %cst_204 = arith.constant 3.200000e+01 : f32
    %305 = vector.broadcast %cst_204 : f32 to vector<16x1xf32>
    %306 = arith.divf %304, %305 : vector<16x1xf32>
    %307 = vector.broadcast %299 : vector<16x1xf32> to vector<16x32xf32>
    %308 = arith.subf %289, %307 : vector<16x32xf32>
    %cst_205 = arith.constant 9.99999974E-6 : f32
    %309 = vector.broadcast %cst_205 : f32 to vector<16x1xf32>
    %310 = arith.addf %306, %309 : vector<16x1xf32>
    %311 = math.rsqrt %310 : vector<16x1xf32>
    %312 = vector.broadcast %311 : vector<16x1xf32> to vector<16x32xf32>
    %313 = arith.mulf %308, %312 : vector<16x32xf32>
    %314 = vector.broadcast %292 : vector<1x32xf32> to vector<16x32xf32>
    %315 = arith.mulf %313, %314 : vector<16x32xf32>
    %316 = vector.broadcast %295 : vector<1x32xf32> to vector<16x32xf32>
    %317 = arith.addf %315, %316 : vector<16x32xf32>
    %c1_206 = arith.constant 1 : index
    %c0_207 = arith.constant 0 : index
    %c0_208 = arith.constant 0 : index
    %c0_209 = arith.constant 0 : index
    %318 = vector.load %arg3[%c1_206, %c0_207, %c0_208, %c0_209] : memref<2x2x64x64xf32, #tpu.memory_space<vmem>>, vector<1x1x64x64xf32>
    %319 = vector.shape_cast %318 : vector<1x1x64x64xf32> to vector<64x64xf32>
    %320 = vector.extract_strided_slice %319 {offsets = [0, 0], sizes = [32, 64], strides = [1, 1]} : vector<64x64xf32> to vector<32x64xf32>
    %c1_210 = arith.constant 1 : index
    %c1_211 = arith.constant 1 : index
    %c0_212 = arith.constant 0 : index
    %c0_213 = arith.constant 0 : index
    %321 = vector.load %arg3[%c1_210, %c1_211, %c0_212, %c0_213] : memref<2x2x64x64xf32, #tpu.memory_space<vmem>>, vector<1x1x64x64xf32>
    %322 = vector.shape_cast %321 : vector<1x1x64x64xf32> to vector<64x64xf32>
    %323 = vector.extract_strided_slice %322 {offsets = [0, 0], sizes = [64, 32], strides = [1, 1]} : vector<64x64xf32> to vector<64x32xf32>
    %cst_214 = arith.constant dense<0.000000e+00> : vector<16x64xf32>
    %324 = tpu.matmul %317, %320, %cst_214 {dimension_numbers = #tpu.dot_dimension_numbers<[1], [0], [0], [1], [0, 0, 1, 1], [], []>} : vector<16x32xf32>, vector<32x64xf32>, vector<16x64xf32> -> vector<16x64xf32>
    %c1_215 = arith.constant 1 : index
    %c9_216 = arith.constant 9 : index
    %c0_217 = arith.constant 0 : index
    %325 = vector.load %arg4[%c1_215, %c9_216, %c0_217] : memref<2x16x128xf32, #tpu.memory_space<vmem>>, vector<1x1x128xf32>
    %326 = vector.shape_cast %325 : vector<1x1x128xf32> to vector<1x128xf32>
    %327 = vector.extract_strided_slice %326 {offsets = [0, 0], sizes = [1, 64], strides = [1, 1]} : vector<1x128xf32> to vector<1x64xf32>
    %328 = vector.broadcast %327 : vector<1x64xf32> to vector<16x64xf32>
    %329 = arith.addf %324, %328 : vector<16x64xf32>
    %cst_218 = arith.constant 5.000000e-01 : f32
    %330 = vector.broadcast %cst_218 : f32 to vector<16x64xf32>
    %331 = arith.mulf %330, %329 : vector<16x64xf32>
    %cst_219 = arith.constant 4.471500e-02 : f32
    %332 = vector.broadcast %cst_219 : f32 to vector<16x64xf32>
    %333 = arith.mulf %332, %329 : vector<16x64xf32>
    %334 = arith.mulf %333, %329 : vector<16x64xf32>
    %335 = arith.mulf %334, %329 : vector<16x64xf32>
    %336 = arith.addf %329, %335 : vector<16x64xf32>
    %cst_220 = arith.constant 0.797884583 : f32
    %337 = vector.broadcast %cst_220 : f32 to vector<16x64xf32>
    %338 = arith.mulf %337, %336 : vector<16x64xf32>
    %339 = math.tanh %338 : vector<16x64xf32>
    %cst_221 = arith.constant 1.000000e+00 : f32
    %340 = vector.broadcast %cst_221 : f32 to vector<16x64xf32>
    %341 = arith.addf %340, %339 : vector<16x64xf32>
    %342 = arith.mulf %331, %341 : vector<16x64xf32>
    %cst_222 = arith.constant dense<0.000000e+00> : vector<16x32xf32>
    %343 = tpu.matmul %342, %323, %cst_222 {dimension_numbers = #tpu.dot_dimension_numbers<[1], [0], [0], [1], [0, 0, 1, 1], [], []>} : vector<16x64xf32>, vector<64x32xf32>, vector<16x32xf32> -> vector<16x32xf32>
    %c1_223 = arith.constant 1 : index
    %c10_224 = arith.constant 10 : index
    %c0_225 = arith.constant 0 : index
    %344 = vector.load %arg4[%c1_223, %c10_224, %c0_225] : memref<2x16x128xf32, #tpu.memory_space<vmem>>, vector<1x1x128xf32>
    %345 = vector.shape_cast %344 : vector<1x1x128xf32> to vector<1x128xf32>
    %346 = vector.extract_strided_slice %345 {offsets = [0, 0], sizes = [1, 32], strides = [1, 1]} : vector<1x128xf32> to vector<1x32xf32>
    %347 = vector.broadcast %346 : vector<1x32xf32> to vector<16x32xf32>
    %348 = arith.addf %343, %347 : vector<16x32xf32>
    %349 = arith.addf %348, %317 : vector<16x32xf32>
    %c1_226 = arith.constant 1 : index
    %c11_227 = arith.constant 11 : index
    %c0_228 = arith.constant 0 : index
    %350 = vector.load %arg4[%c1_226, %c11_227, %c0_228] : memref<2x16x128xf32, #tpu.memory_space<vmem>>, vector<1x1x128xf32>
    %351 = vector.shape_cast %350 : vector<1x1x128xf32> to vector<1x128xf32>
    %352 = vector.extract_strided_slice %351 {offsets = [0, 0], sizes = [1, 32], strides = [1, 1]} : vector<1x128xf32> to vector<1x32xf32>
    %c1_229 = arith.constant 1 : index
    %c12_230 = arith.constant 12 : index
    %c0_231 = arith.constant 0 : index
    %353 = vector.load %arg4[%c1_229, %c12_230, %c0_231] : memref<2x16x128xf32, #tpu.memory_space<vmem>>, vector<1x1x128xf32>
    %354 = vector.shape_cast %353 : vector<1x1x128xf32> to vector<1x128xf32>
    %355 = vector.extract_strided_slice %354 {offsets = [0, 0], sizes = [1, 32], strides = [1, 1]} : vector<1x128xf32> to vector<1x32xf32>
    %cst_232 = arith.constant dense<0.000000e+00> : vector<16xf32>
    %356 = vector.multi_reduction <add>, %349, %cst_232 [1] : vector<16x32xf32> to vector<16xf32>
    %357 = vector.shape_cast %356 : vector<16xf32> to vector<16x1xf32>
    %cst_233 = arith.constant 3.200000e+01 : f32
    %358 = vector.broadcast %cst_233 : f32 to vector<16x1xf32>
    %359 = arith.divf %357, %358 : vector<16x1xf32>
    %360 = vector.broadcast %359 : vector<16x1xf32> to vector<16x32xf32>
    %361 = arith.subf %349, %360 : vector<16x32xf32>
    %362 = arith.mulf %361, %361 : vector<16x32xf32>
    %cst_234 = arith.constant dense<0.000000e+00> : vector<16xf32>
    %363 = vector.multi_reduction <add>, %362, %cst_234 [1] : vector<16x32xf32> to vector<16xf32>
    %364 = vector.shape_cast %363 : vector<16xf32> to vector<16x1xf32>
    %cst_235 = arith.constant 3.200000e+01 : f32
    %365 = vector.broadcast %cst_235 : f32 to vector<16x1xf32>
    %366 = arith.divf %364, %365 : vector<16x1xf32>
    %367 = vector.broadcast %359 : vector<16x1xf32> to vector<16x32xf32>
    %368 = arith.subf %349, %367 : vector<16x32xf32>
    %cst_236 = arith.constant 9.99999974E-6 : f32
    %369 = vector.broadcast %cst_236 : f32 to vector<16x1xf32>
    %370 = arith.addf %366, %369 : vector<16x1xf32>
    %371 = math.rsqrt %370 : vector<16x1xf32>
    %372 = vector.broadcast %371 : vector<16x1xf32> to vector<16x32xf32>
    %373 = arith.mulf %368, %372 : vector<16x32xf32>
    %374 = vector.broadcast %352 : vector<1x32xf32> to vector<16x32xf32>
    %375 = arith.mulf %373, %374 : vector<16x32xf32>
    %376 = vector.broadcast %355 : vector<1x32xf32> to vector<16x32xf32>
    %377 = arith.addf %375, %376 : vector<16x32xf32>
    %378 = vector.extract_strided_slice %377 {offsets = [0, 0], sizes = [1, 32], strides = [1, 1]} : vector<16x32xf32> to vector<1x32xf32>
    %379 = vector.extract_strided_slice %377 {offsets = [8, 0], sizes = [1, 32], strides = [1, 1]} : vector<16x32xf32> to vector<1x32xf32>
    %380 = tpu.concatenate %378, %379 in 0 : vector<1x32xf32>, vector<1x32xf32> -> vector<2x32xf32>
    %c0_237 = arith.constant 0 : index
    %c0_238 = arith.constant 0 : index
    %c0_239 = arith.constant 0 : index
    %381 = vector.load %arg6[%c0_237, %c0_238, %c0_239] : memref<2x32x128xf32, #tpu.memory_space<vmem>>, vector<1x32x128xf32>
    %382 = vector.shape_cast %381 : vector<1x32x128xf32> to vector<32x128xf32>
    %383 = vector.extract_strided_slice %382 {offsets = [0, 0], sizes = [32, 32], strides = [1, 1]} : vector<32x128xf32> to vector<32x32xf32>
    %cst_240 = arith.constant dense<0.000000e+00> : vector<2x32xf32>
    %384 = tpu.matmul %380, %383, %cst_240 {dimension_numbers = #tpu.dot_dimension_numbers<[1], [0], [0], [1], [0, 0, 1, 1], [], []>} : vector<2x32xf32>, vector<32x32xf32>, vector<2x32xf32> -> vector<2x32xf32>
    %c2_241 = arith.constant 2 : index
    %c0_242 = arith.constant 0 : index
    %385 = vector.load %arg5[%c2_241, %c0_242] : memref<4x128xf32, #tpu.memory_space<vmem>>, vector<1x128xf32>
    %386 = vector.extract_strided_slice %385 {offsets = [0, 0], sizes = [1, 32], strides = [1, 1]} : vector<1x128xf32> to vector<1x32xf32>
    %387 = vector.broadcast %386 : vector<1x32xf32> to vector<2x32xf32>
    %388 = arith.addf %384, %387 : vector<2x32xf32>
    %389 = math.tanh %388 : vector<2x32xf32>
    %c1_243 = arith.constant 1 : index
    %c0_244 = arith.constant 0 : index
    %c0_245 = arith.constant 0 : index
    %390 = vector.load %arg6[%c1_243, %c0_244, %c0_245] : memref<2x32x128xf32, #tpu.memory_space<vmem>>, vector<1x32x128xf32>
    %391 = vector.shape_cast %390 : vector<1x32x128xf32> to vector<32x128xf32>
    %cst_246 = arith.constant dense<0.000000e+00> : vector<2x128xf32>
    %392 = tpu.matmul %389, %391, %cst_246 {dimension_numbers = #tpu.dot_dimension_numbers<[1], [0], [0], [1], [0, 0, 1, 1], [], []>} : vector<2x32xf32>, vector<32x128xf32>, vector<2x128xf32> -> vector<2x128xf32>
    %c3_247 = arith.constant 3 : index
    %c0_248 = arith.constant 0 : index
    %393 = vector.load %arg5[%c3_247, %c0_248] : memref<4x128xf32, #tpu.memory_space<vmem>>, vector<1x128xf32>
    %394 = vector.broadcast %393 : vector<1x128xf32> to vector<2x128xf32>
    %395 = arith.addf %392, %394 : vector<2x128xf32>
    %c0_249 = arith.constant 0 : index
    %c0_250 = arith.constant 0 : index
    %396 = vector.load %arg7[%c0_249, %c0_250] : memref<2x128xf32, #tpu.memory_space<vmem>>, vector<2x128xf32>
    tpu.vector_store %arg7[%c0_249, %c0_250], %395 {strides = array<i32>} : memref<2x128xf32, #tpu.memory_space<vmem>>, vector<2x128xf32>,
    return
  }
}

</mosaic_0001>

<bundles_post_ra>
// kernel: forward.1
= control target key start
LH: loop header
LB: loop body
LE: loop exit
PB: predicated region body
PF: predicated region fallthrough
CT: control target
= control target key end

     0   :  { %12 = vsyncpa [#allocation3], 0  ;;  %s1669_s27 = smov [#allocation2]   ;;  %s1670_s29 = smov 128   ;;  %s2109_s0 = inlined_call_operand.vmem [shape: f32[16,32], index: 0, kind: input, shape index: {}]   ;;  %s2110_s1 = inlined_call_operand.vmem [shape: f32[16,16], index: 1, kind: input, shape index: {}]   ;;  %s2111_s2 = inlined_call_operand.hbm [shape: f32[2,2,4,32,32], index: 2, kind: input, shape index: {}]   ;;  %s2112_s3 = inlined_call_operand.vmem [shape: f32[2,2,64,64], index: 3, kind: input, shape index: {}]   ;;  %s2113_s4 = inlined_call_operand.vmem [shape: f32[2,16,128], index: 4, kind: input, shape index: {}]   ;;  %s2114_s5 = inlined_call_operand.vmem [shape: f32[4,128], index: 5, kind: input, shape index: {}]   ;;  %s2115_s6 = inlined_call_operand.vmem [shape: f32[2,32,128], index: 6, kind: input, shape index: {}]   ;;  %s2116_s7 = inlined_call_operand.vmem [shape: f32[2,128], index: 7, kind: output, shape index: {}]  }
   0x1   :  { %s21_s26 = sshll.u32 %s2111_s2, 4  ;;  %s23_s28 = sshll.u32 %s1669_s27, 4  ;;  %s22_s26 = int_to_ptr.hbm [resolvable:$true] %s21_s26  ;;  %s24_s28 = int_to_ptr.vmem [resolvable:$true] %s23_s28 }
   0x2   :  { %s1671_s30 = smov 8  }
   0x3   :  { %29 = dma.hbm_to_vmem [thread:$0]  %s22_s26, 8192, %s24_s28, [#allocation3], %s1670_s29, %s1670_s29, %s1671_s30  }
   0x4   :  { %1667 = dma.done.wait [#allocation3], 8192  }
   0x5   :  { %1668 = vsyncadd [#allocation3], 4294959104  ;;  %vm46_vm0 = vcmask 261120   ;;  %v42_v0 = vld [vmem:[%s2109_s0] sm:$0xff]  ;;  %v43_v1 = vld [vmem:[%s2109_s0 + $0x8] sm:$0xff]  ;;  %v1672_v4 = vmov 32.0  }
   0x6   :  { %v47_v2 = vsel %vm46_vm0, %v42_v0, 0.0  ;;  %v50_v3 = vsel %vm46_vm0, %v43_v1, 0.0  ;;  %1579 = vrcp.f32 %v1672_v4  ;;  %v109_v21 = vld [vmem:[#allocation2 + $0x18] sm:$0xff]  ;;  %v108_v24 = vld [vmem:[#allocation2 + $0x10] sm:$0xff]  ;;  %v107_v27 = vld [vmem:[#allocation2 + $0x8] sm:$0xff]  ;;  %vm241_vm8 = vcmask 130048  }
   0x7   :  { %48 = vadd.xlane.f32.xlu0 %v47_v2  ;;  %v114_v22 = vld [vmem:[#allocation2 + $0x38] sm:$0xff]  ;;  %145 = vmatpush.msra.mxu0 %v109_v21  ;;  %v113_v25 = vld [vmem:[#allocation2 + $0x30] sm:$0xff]  ;;  %v112_v28 = vld [vmem:[#allocation2 + $0x28] sm:$0xff]  ;;  %vm654_vm15 = vcmask 523264  }
   0x8   :  { %v119_v23 = vld [vmem:[#allocation2 + $0x58] sm:$0xff]  ;;  %170 = vmatpush.msra.mxu1 %v114_v22  ;;  %v118_v26 = vld [vmem:[#allocation2 + $0x50] sm:$0xff]  ;;  %v117_v29 = vld [vmem:[#allocation2 + $0x48] sm:$0xff] }
   0x9   :  { %195 = vmatpush.msra.mxu2 %v119_v23  ;;  %146 = vmatpush.msra.mxu0 %v108_v24  ;;  %v106_v30 = vld [vmem:[#allocation2] sm:$0xff]  ;;  %v297_v36 = vld [vmem:[#allocation2 + $0x98] sm:$0xff]  ;;  %v296_v38 = vld [vmem:[#allocation2 + $0x90] sm:$0xff] }
   0xa   :  { %171 = vmatpush.msra.mxu1 %v113_v25  ;;  %v111_v31 = vld [vmem:[#allocation2 + $0x20] sm:$0xff]  ;;  %v302_v37 = vld [vmem:[#allocation2 + $0xb8] sm:$0xff]  ;;  %v301_v39 = vld [vmem:[#allocation2 + $0xb0] sm:$0xff] }
   0xb   :  { %196 = vmatpush.msra.mxu2 %v118_v26  ;;  %147 = vmatpush.msra.mxu0 %v107_v27  ;;  %v116_v32 = vld [vmem:[#allocation2 + $0x40] sm:$0xff]  ;;  %v295_v41 = vld [vmem:[#allocation2 + $0x88] sm:$0xff] }
   0xc   :  { %v1580_v5 = vpop.eup %1579  ;;  %172 = vmatpush.msra.mxu1 %v112_v28  ;;  %v300_v42 = vld [vmem:[#allocation2 + $0xa8] sm:$0xff]  ;;  %v294_v44 = vld [vmem:[#allocation2 + $0x80] sm:$0xff] }
   0xd   :  { %v54_v6 = vmul.f32 32.0, %v1580_v5  ;;  %vm58_vm1 = vweird.f32 %v1580_v5  ;;  %197 = vmatpush.msra.mxu2 %v117_v29  ;;  %148 = vmatpush.msra.mxu0 %v106_v30  ;;  %v299_v45 = vld [vmem:[#allocation2 + $0xa0] sm:$0xff]  ;;  %v305_v21 = vld [vmem:[#allocation2 + $0xc8] sm:$0xff] }
   0xe   :  { %173 = vmatpush.msra.mxu1 %v111_v31  ;;  %v1549_v55 = vld [vmem:[%s2114_s5] ss:$0 sm:$0xff]  ;;  %v1550_v58 = vld [vmem:[%s2114_s5 + $0x1] ss:$0 sm:$0xff]  ;;  %v1555_v26 = vld [vmem:[%s2113_s4 + $0x3] ss:$0 sm:$0xff] }
   0xf   :  { %51 = vadd.xlane.f32.xlu0 %v50_v3  ;;  %v55_v7 = vsub.f32 1.0, %v54_v6  ;;  %198 = vmatpush.msra.mxu2 %v116_v32  ;;  %v1552_v6 = vld [vmem:[%s2113_s4 + $0x2] ss:$0 sm:$0xff] }
  0x10   :  { %327 = vmatpush.msrb.mxu1 %v297_v36  ;;  %v304_v22 = vld [vmem:[#allocation2 + $0xc0] sm:$0xff] }
  0x11   :  { %v56_v8 = vmul.f32 %v1580_v5, %v55_v7  ;;  %352 = vmatpush.msrb.mxu2 %v302_v37  ;;  %v1797_v30 = vld [vmem:[%s2110_s1] sm:$0xff] }
  0x12   :  { %328 = vmatpush.msrb.mxu1 %v296_v38 }
  0x13   :  { %v57_v9 = vadd.f32 %v1580_v5, %v56_v8  ;;  %353 = vmatpush.msrb.mxu2 %v301_v39  ;;  %v1556_v39 = vld [vmem:[%s2113_s4 + $0x5] ss:$0 sm:$0xff] }
  0x14   :  { %329 = vmatpush.msrb.mxu1 %v295_v41 }
  0x15   :  { %v1724_v10 = vsel %vm58_vm1, %v1580_v5, %v57_v9  ;;  %354 = vmatpush.msrb.mxu2 %v300_v42 }
  0x16   :  { %330 = vmatpush.msrb.mxu1 %v294_v44 }
  0x17   :  { %355 = vmatpush.msrb.mxu2 %v299_v45 }
  0x7a   :  { %v49_v11 = vpop.xlane.xlu0 %48 }
  0x7b   :  { %v60_v12 = vmul.f32 %v1724_v10, %v49_v11 }
  0x7d   :  { %v1727_v13 = vsub.f32 %v42_v0, %v60_v12  ;;  %v1551_v12 = vld [vmem:[%s2113_s4] ss:$0 sm:$0xff] }
  0x7f   :  { %v64_v14 = vmul.f32 %v1727_v13, %v1727_v13 }
  0x81   :  { %v66_v15 = vsel %vm46_vm0, %v64_v14, 0.0  ;;  %v307_v14 = vld [vmem:[#allocation2 + $0xd8] sm:$0xff] }
  0x82   :  { %67 = vadd.xlane.f32.xlu1 %v66_v15  ;;  %v52_v16 = vpop.xlane.xlu0 %51  ;;  %v1553_v15 = vld [vmem:[%s2113_s4 + $0x4] ss:$0 sm:$0xff] }
  0x83   :  { %v61_v17 = vmul.f32 %v1724_v10, %v52_v16 }
  0x85   :  { %v1733_v18 = vsub.f32 %v43_v1, %v61_v17 }
  0x87   :  { %v65_v19 = vmul.f32 %v1733_v18, %v1733_v18 }
  0x89   :  { %v69_v20 = vsel %vm46_vm0, %v65_v19, 0.0  ;;  %v306_v19 = vld [vmem:[#allocation2 + $0xd0] sm:$0xff] }
  0x8a   :  { %70 = vadd.xlane.f32.xlu1 %v69_v20 }
  0xf5   :  { %v68_v33 = vpop.xlane.xlu1 %67 }
  0xf6   :  { %v72_v34 = vmul.f32 %v68_v33, %v1724_v10 }
  0xf8   :  { %v74_v35 = vadd.f32 1e-05, %v72_v34  ;;  %v1804_v34 = vld [vmem:[%s2110_s1 + $0x8] sm:$0xff] }
  0xfa   :  { %1581 = vrsqrt.f32 %v74_v35  ;;  %vm82_vm3 = vweird.f32 %v74_v35 }
  0xfd   :  { %v71_v40 = vpop.xlane.xlu1 %70 }
  0xfe   :  { %v73_v43 = vmul.f32 %v71_v40, %v1724_v10 }
 0x100   :  { %v1582_v46 = vpop.eup %1581  ;;  %v75_v47 = vadd.f32 1e-05, %v73_v43 }
 0x101   :  { %v77_v48 = vmul.f32 %v1582_v46, %v74_v35  ;;  %vm83_vm2 = vweird.f32 %v1582_v46 }
 0x102   :  { %1583 = vrsqrt.f32 %v75_v47  ;;  %vm84_vm4 = vmor %vm82_vm3, %vm83_vm2  ;;  %vm92_vm6 = vweird.f32 %v75_v47 }
 0x103   :  { %v78_v49 = vmul.f32 %v1582_v46, %v77_v48 }
 0x105   :  { %v79_v50 = vmul.f32 0.5, %v78_v49 }
 0x107   :  { %v80_v51 = vsub.f32 1.5, %v79_v50 }
 0x108   :  { %v1584_v52 = vpop.eup %1583 }
 0x109   :  { %v81_v53 = vmul.f32 %v1582_v46, %v80_v51  ;;  %v87_v54 = vmul.f32 %v1584_v52, %v75_v47  ;;  %vm93_vm5 = vweird.f32 %v1584_v52 }
 0x10a   :  { %vm94_vm7 = vmor %vm92_vm6, %vm93_vm5 }
 0x10b   :  { %v85_v56 = vsel %vm84_vm4, %v1582_v46, %v81_v53  ;;  %v88_v57 = vmul.f32 %v1584_v52, %v87_v54  ;;  %v124_v54 = vld [vmem:[#allocation2 + $0x78] sm:$0xff] }
 0x10c   :  { %v96_v59 = vmul.f32 %v85_v56, %v1727_v13  ;;  %v122_v56 = vld [vmem:[#allocation2 + $0x68] sm:$0xff] }
 0x10d   :  { %v89_v60 = vmul.f32 0.5, %v88_v57 }
 0x10e   :  { %v99_v61 = vmul.f32 %v1549_v55, %v96_v59 }
 0x10f   :  { %v90_v62 = vsub.f32 1.5, %v89_v60 }
 0x110   :  { %v1747_v63 = vadd.f32 %v1550_v58, %v99_v61 }
 0x111   :  { %v91_v0 = vmul.f32 %v1584_v52, %v90_v62 }
 0x112   :  { %1442 = vmatmul.msk.f32.vlgmr.msra.gmra.mxu0 %vm46_vm0, %v1747_v63  ;;  %1444 = vmatmul.msk.f32.vlgmr.msra.gmra.mxu1 %vm46_vm0, %v1747_v63 }
 0x113   :  { %v95_v1 = vsel %vm94_vm7, %v1584_v52, %v91_v0  ;;  %1446 = vmatmul.msk.f32.vlgmr.msra.gmra.mxu2 %vm46_vm0, %v1747_v63  ;;  %v1554_v0 = vld [vmem:[%s2113_s4 + $0x1] ss:$0 sm:$0xff] }
 0x114   :  { %v97_v2 = vmul.f32 %v95_v1, %v1733_v18 }
 0x116   :  { %v100_v3 = vmul.f32 %v1549_v55, %v97_v2  ;;  %v123_v55 = vld [vmem:[#allocation2 + $0x70] sm:$0xff] }
 0x118   :  { %v1756_v4 = vadd.f32 %v1550_v58, %v100_v3 }
 0x11a   :  { %1443 = vmatmul.msk.f32.gmra.mxu0 %vm46_vm0, %v1756_v4  ;;  %1445 = vmatmul.msk.f32.gmra.mxu1 %vm46_vm0, %v1756_v4 }
 0x11b   :  { %1447 = vmatmul.msk.f32.gmra.mxu2 %vm46_vm0, %v1756_v4 }
 0x122   :  { %1454 = vmatmul.msk.f32.vlgmr.msrb.gmra.mxu1 %vm46_vm0, %v1747_v63 }
 0x123   :  { %1456 = vmatmul.msk.f32.vlgmr.msrb.gmra.mxu2 %vm46_vm0, %v1747_v63 }
 0x12a   :  { %1455 = vmatmul.msk.f32.gmra.mxu1 %vm46_vm0, %v1756_v4 }
 0x12b   :  { %1457 = vmatmul.msk.f32.gmra.mxu2 %vm46_vm0, %v1756_v4 }
 0x18f   :  { %v175_v5 = vpop.f32.mrf.mxu1  ;;  %v150_v11 = vpop.f32.mrf.mxu0 }
 0x190   :  { %v176_v13 = vadd.f32 %v1552_v6, %v175_v5  ;;  %v151_v17 = vadd.f32 %v1551_v12, %v150_v11  ;;  %v121_v5 = vld [vmem:[#allocation2 + $0x60] sm:$0xff] }
 0x196   :  { %v200_v7 = vpop.f32.mrf.mxu2 }
 0x197   :  { %v178_v8 = vpop.f32.mrf.mxu1  ;;  %v201_v20 = vadd.f32 %v1553_v15, %v200_v7  ;;  %v153_v23 = vpop.f32.mrf.mxu0 }
 0x198   :  { %v179_v9 = vadd.f32 %v1552_v6, %v178_v8  ;;  %v154_v25 = vadd.f32 %v1551_v12, %v153_v23 }
 0x19a   :  { %1448 = vmatpush.xpose.msk.msra.mxu3 %vm46_vm0, %v179_v9 }
 0x19e   :  { %v203_v16 = vpop.f32.mrf.mxu2  ;;  %1449 = vmatpush.xpose.msk.msra.mxu3 %vm46_vm0, %v176_v13 }
 0x19f   :  { %v204_v18 = vadd.f32 %v1553_v15, %v203_v16  ;;  %v332_v62 = vpop.f32.mrf.mxu1 }
 0x1a0   :  { %v333_v1 = vadd.f32 %v1554_v0, %v332_v62  ;;  %v591_v62 = vld [vmem:[%s2112_s3 + $0x8] sm:$0xff] }
 0x1a1   :  { %284 = vmatpush.msrb.mxu0 %v204_v18  ;;  %1450 = vmatmul.msk.f32.vlgmr.msra.gmra.mxu3 %vm46_vm0, %v151_v17 }
 0x1a2   :  { %377 = vmatpush.msrb.mxu3 %v307_v14 }
 0x1a3   :  { %285 = vmatpush.msrb.mxu0 %v201_v20 }
 0x1a4   :  { %378 = vmatpush.msrb.mxu3 %v306_v19 }
 0x1a6   :  { %379 = vmatpush.msrb.mxu3 %v305_v21  ;;  %v357_v24 = vpop.f32.mrf.mxu2 }
 0x1a7   :  { %v358_v29 = vadd.f32 %v1555_v26, %v357_v24  ;;  %v335_v2 = vpop.f32.mrf.mxu1 }
 0x1a8   :  { %380 = vmatpush.msrb.mxu3 %v304_v22  ;;  %v336_v3 = vadd.f32 %v1554_v0, %v335_v2  ;;  %v590_v0 = vld [vmem:[%s2112_s3] sm:$0xff] }
 0x1a9   :  { %1451 = vmatmul.msk.f32.gmra.mxu3 %vm46_vm0, %v154_v25  ;;  %v312_v25 = vld [vmem:[#allocation2 + $0xf8] sm:$0xff] }
 0x1aa   :  { %521 = vmatpush.msra.mxu3 %v124_v54  ;;  %492 = vmatpush.msra.mxu2 %v312_v25 }
 0x1ac   :  { %522 = vmatpush.msra.mxu3 %v123_v55 }
 0x1ae   :  { %v360_v27 = vpop.f32.mrf.mxu2  ;;  %523 = vmatpush.msra.mxu3 %v122_v56 }
 0x1af   :  { %v361_v28 = vadd.f32 %v1555_v26, %v360_v27  ;;  %v311_v26 = vld [vmem:[#allocation2 + $0xf0] sm:$0xff]  ;;  %v310_v27 = vld [vmem:[#allocation2 + $0xe8] sm:$0xff] }
 0x1b0   :  { %524 = vmatpush.msra.mxu3 %v121_v5  ;;  %493 = vmatpush.msra.mxu2 %v311_v26 }
 0x1b1   :  { %1460 = vmatpush.xpose.msk.msra.mxu0 %vm46_vm0, %v361_v28  ;;  %1458 = vmatmul.msk.f32.vlgmr.msrb.gmra.mxu3 %vm46_vm0, %v1747_v63 }
 0x1b2   :  { %494 = vmatpush.msra.mxu2 %v310_v27 }
 0x1b5   :  { %1461 = vmatpush.xpose.msk.msra.mxu0 %vm46_vm0, %v358_v29 }
 0x1b9   :  { %1459 = vmatmul.msk.f32.gmra.mxu3 %vm46_vm0, %v1756_v4 }
 0x224   :  { %v235_v31 = vpop.f32.mrf.mxu3 }
 0x225   :  { %v236_v32 = vadd.f32 %v235_v31, %v1797_v30 }
 0x227   :  { %v242_v33 = vsel %vm241_vm8, %v236_v32, -inf }
 0x228   :  { %243 = vmax.xlane.f32.xlu2 %v242_v33 }
 0x22c   :  { %v238_v35 = vpop.f32.mrf.mxu3 }
 0x22d   :  { %v239_v36 = vadd.f32 %v238_v35, %v1804_v34 }
 0x22f   :  { %v245_v37 = vsel %vm241_vm8, %v239_v36, -inf }
 0x230   :  { %246 = vmax.xlane.f32.xlu2 %v245_v37 }
 0x234   :  { %v382_v38 = vpop.f32.mrf.mxu3 }
 0x235   :  { %v383_v42 = vadd.f32 %v1556_v39, %v382_v38 }
 0x23c   :  { %v385_v40 = vpop.f32.mrf.mxu3 }
 0x23d   :  { %v386_v41 = vadd.f32 %v1556_v39, %v385_v40  ;;  %v1557_v40 = vld [vmem:[%s2113_s4 + $0x6] ss:$0 sm:$0xff] }
 0x23f   :  { %465 = vmatpush.msra.mxu1 %v386_v41 }
 0x241   :  { %466 = vmatpush.msra.mxu1 %v383_v42 }
 0x29b   :  { %v244_v43 = vpop.xlane.xlu2 %243 }
 0x29c   :  { %v248_v44 = vsub.f32 %v236_v32, %v244_v43 }
 0x29e   :  { %v250_v45 = vmul.f32 1.442695, %v248_v44 }
 0x2a0   :  { %1585 = vpow2.f32 %v250_v45 }
 0x2a3   :  { %v247_v46 = vpop.xlane.xlu2 %246 }
 0x2a4   :  { %v249_v47 = vsub.f32 %v239_v36, %v247_v46  ;;  %v309_v36 = vld [vmem:[#allocation2 + $0xe0] sm:$0xff] }
 0x2a5   :  { %495 = vmatpush.msra.mxu2 %v309_v36  ;;  %v1474_v36 = vld [vmem:[%s2112_s3 + $0x60] sm:$0xff] }
 0x2a6   :  { %v1586_v48 = vpop.eup %1585  ;;  %v252_v49 = vmul.f32 1.442695, %v249_v47 }
 0x2a7   :  { %v254_v50 = vsel %vm241_vm8, %v1586_v48, 0.0 }
 0x2a8   :  { %1587 = vpow2.f32 %v252_v49  ;;  %255 = vadd.xlane.f32.xlu0 %v254_v50 }
 0x2ae   :  { %v1588_v51 = vpop.eup %1587 }
 0x2af   :  { %v257_v52 = vsel %vm241_vm8, %v1588_v51, 0.0 }
 0x2b0   :  { %258 = vadd.xlane.f32.xlu1 %v257_v52 }
 0x31b   :  { %v256_v53 = vpop.xlane.xlu0 %255 }
 0x31c   :  { %1589 = vrcp.f32 %v256_v53 }
 0x322   :  { %v1590_v57 = vpop.eup %1589 }
 0x323   :  { %v259_v58 = vpop.xlane.xlu1 %258  ;;  %v262_v59 = vmul.f32 %v1590_v57, %v1586_v48 }
 0x324   :  { %1591 = vrcp.f32 %v259_v58 }
 0x325   :  { %1452 = vmatmul.msk.f32.vlgmr.msrb.gmra.mxu0 %vm241_vm8, %v262_v59 }
 0x32a   :  { %v1592_v60 = vpop.eup %1591 }
 0x32b   :  { %v263_v61 = vmul.f32 %v1592_v60, %v1588_v51 }
 0x32d   :  { %1453 = vmatmul.msk.f32.gmra.mxu0 %vm241_vm8, %v263_v61  ;;  %v592_v61 = vld [vmem:[%s2112_s3 + $0x10] sm:$0xff] }
 0x335   :  { %1462 = vmatmul.msk.f32.vlgmr.msra.gmra.mxu0 %vm46_vm0, %v333_v1 }
 0x33d   :  { %1463 = vmatmul.msk.f32.gmra.mxu0 %vm46_vm0, %v336_v3 }
 0x3a2   :  { %v287_v6 = vpop.f32.mrf.mxu0 }
 0x3a3   :  { %1468 = vmatmul.msk.f32.vlgmr.msra.gmra.mxu3 %vm46_vm0, %v287_v6 }
 0x3aa   :  { %v290_v7 = vpop.f32.mrf.mxu0 }
 0x3ab   :  { %1469 = vmatmul.msk.f32.gmra.mxu3 %vm46_vm0, %v290_v7 }
 0x3b2   :  { %v417_v8 = vpop.f32.mrf.mxu0 }
 0x3b3   :  { %v418_v9 = vadd.f32 %v417_v8, %v1797_v30 }
 0x3b5   :  { %v423_v11 = vsel %vm241_vm8, %v418_v9, -inf }
 0x3b6   :  { %424 = vmax.xlane.f32.xlu2 %v423_v11 }
 0x3ba   :  { %v420_v12 = vpop.f32.mrf.mxu0 }
 0x3bb   :  { %v421_v13 = vadd.f32 %v420_v12, %v1804_v34 }
 0x3bd   :  { %v426_v14 = vsel %vm241_vm8, %v421_v13, -inf }
 0x3be   :  { %427 = vmax.xlane.f32.xlu0 %v426_v14 }
 0x426   :  { %v526_v39 = vpop.f32.mrf.mxu3 }
 0x429   :  { %v425_v15 = vpop.xlane.xlu2 %424 }
 0x42a   :  { %v429_v16 = vsub.f32 %v418_v9, %v425_v15 }
 0x42c   :  { %v431_v17 = vmul.f32 1.442695, %v429_v16 }
 0x42e   :  { %1593 = vpow2.f32 %v431_v17  ;;  %v529_v46 = vpop.f32.mrf.mxu3  ;;  %v1558_v17 = vld [vmem:[%s2113_s4 + $0x7] ss:$0 sm:$0xff] }
 0x431   :  { %v428_v18 = vpop.xlane.xlu0 %427 }
 0x432   :  { %v430_v19 = vsub.f32 %v421_v13, %v428_v18 }
 0x434   :  { %v1594_v20 = vpop.eup %1593  ;;  %v433_v21 = vmul.f32 1.442695, %v430_v19 }
 0x435   :  { %v435_v22 = vsel %vm241_vm8, %v1594_v20, 0.0 }
 0x436   :  { %1595 = vpow2.f32 %v433_v21  ;;  %436 = vadd.xlane.f32.xlu1 %v435_v22  ;;  %v1559_v21 = vld [vmem:[%s2113_s4 + $0x8] ss:$0 sm:$0xff] }
 0x43c   :  { %v1596_v23 = vpop.eup %1595 }
 0x43d   :  { %v438_v24 = vsel %vm241_vm8, %v1596_v23, 0.0 }
 0x43e   :  { %439 = vadd.xlane.f32.xlu2 %v438_v24 }
 0x4a9   :  { %v437_v28 = vpop.xlane.xlu1 %436 }
 0x4aa   :  { %1597 = vrcp.f32 %v437_v28 }
 0x4b0   :  { %v1598_v29 = vpop.eup %1597 }
 0x4b1   :  { %v443_v31 = vmul.f32 %v1598_v29, %v1594_v20  ;;  %v440_v32 = vpop.xlane.xlu2 %439 }
 0x4b2   :  { %1599 = vrcp.f32 %v440_v32  ;;  %v1477_v32 = vld [vmem:[%s2112_s3 + $0x78] sm:$0xff] }
 0x4b3   :  { %1464 = vmatmul.msk.f32.vlgmr.msra.gmra.mxu1 %vm241_vm8, %v443_v31 }
 0x4b4   :  { %669 = vmatpush.msrb.mxu1 %v1477_v32  ;;  %v749_v32 = vld [vmem:[#allocation2 + $0x140] sm:$0xff] }
 0x4b8   :  { %v1600_v33 = vpop.eup %1599 }
 0x4b9   :  { %v444_v35 = vmul.f32 %v1600_v33, %v1596_v23  ;;  %v1476_v33 = vld [vmem:[%s2112_s3 + $0x70] sm:$0xff] }
 0x4ba   :  { %670 = vmatpush.msrb.mxu1 %v1476_v33 }
 0x4bb   :  { %1465 = vmatmul.msk.f32.gmra.mxu1 %vm241_vm8, %v444_v35  ;;  %v1475_v35 = vld [vmem:[%s2112_s3 + $0x68] sm:$0xff] }
 0x4bc   :  { %671 = vmatpush.msrb.mxu1 %v1475_v35 }
 0x4be   :  { %672 = vmatpush.msrb.mxu1 %v1474_v36 }
 0x530   :  { %v468_v37 = vpop.f32.mrf.mxu1 }
 0x531   :  { %1466 = vmatmul.msk.f32.vlgmr.msra.gmra.mxu2 %vm46_vm0, %v468_v37  ;;  %v1473_v37 = vld [vmem:[%s2112_s3 + $0x58] sm:$0xff] }
 0x532   :  { %673 = vmatpush.msrb.mxu1 %v1473_v37  ;;  %v930_v37 = vld [vmem:[#allocation2 + $0x198] sm:$0xff] }
 0x538   :  { %v471_v38 = vpop.f32.mrf.mxu1 }
 0x539   :  { %1467 = vmatmul.msk.f32.gmra.mxu2 %vm46_vm0, %v471_v38  ;;  %v1472_v38 = vld [vmem:[%s2112_s3 + $0x50] sm:$0xff] }
 0x53a   :  { %674 = vmatpush.msrb.mxu1 %v1472_v38  ;;  %v935_v38 = vld [vmem:[#allocation2 + $0x1b8] sm:$0xff] }
 0x5b4   :  { %v497_v41 = vpop.f32.mrf.mxu2 }
 0x5b5   :  { %v527_v42 = vadd.f32 %v526_v39, %v497_v41  ;;  %v1471_v39 = vld [vmem:[%s2112_s3 + $0x48] sm:$0xff] }
 0x5b6   :  { %675 = vmatpush.msrb.mxu1 %v1471_v39  ;;  %v1560_v41 = vld [vmem:[%s2113_s4 + $0x9] ss:$0 sm:$0xff]  ;;  %v929_v39 = vld [vmem:[#allocation2 + $0x190] sm:$0xff] }
 0x5b7   :  { %v534_v43 = vadd.f32 %v1557_v40, %v527_v42 }
 0x5b9   :  { %v536_v44 = vadd.f32 %v534_v43, %v1747_v63 }
 0x5bb   :  { %v540_v45 = vsel %vm46_vm0, %v536_v44, 0.0 }
 0x5bc   :  { %541 = vadd.xlane.f32.xlu0 %v540_v45  ;;  %v500_v47 = vpop.f32.mrf.mxu2 }
 0x5bd   :  { %v530_v48 = vadd.f32 %v529_v46, %v500_v47 }
 0x5bf   :  { %v535_v49 = vadd.f32 %v1557_v40, %v530_v48  ;;  %v1470_v40 = vld [vmem:[%s2112_s3 + $0x40] sm:$0xff] }
 0x5c0   :  { %676 = vmatpush.msrb.mxu1 %v1470_v40  ;;  %v934_v40 = vld [vmem:[#allocation2 + $0x1b0] sm:$0xff] }
 0x5c1   :  { %v537_v50 = vadd.f32 %v535_v49, %v1756_v4  ;;  %v593_v4 = vld [vmem:[%s2112_s3 + $0x18] sm:$0xff] }
 0x5c2   :  { %623 = vmatpush.msrb.mxu0 %v593_v4 }
 0x5c3   :  { %v543_v51 = vsel %vm46_vm0, %v537_v50, 0.0 }
 0x5c4   :  { %544 = vadd.xlane.f32.xlu1 %v543_v51  ;;  %624 = vmatpush.msrb.mxu0 %v592_v61 }
 0x5c6   :  { %625 = vmatpush.msrb.mxu0 %v591_v62  ;;  %v1561_v62 = vld [vmem:[%s2113_s4 + $0xa] ss:$0 sm:$0xff] }
 0x5c8   :  { %626 = vmatpush.msrb.mxu0 %v590_v0 }
 0x62f   :  { %v542_v52 = vpop.xlane.xlu0 %541 }
 0x630   :  { %v546_v53 = vmul.f32 %v542_v52, %v1724_v10 }
 0x632   :  { %v548_v54 = vsub.f32 %v536_v44, %v546_v53 }
 0x634   :  { %v550_v55 = vmul.f32 %v548_v54, %v548_v54 }
 0x636   :  { %v552_v56 = vsel %vm46_vm0, %v550_v55, 0.0 }
 0x637   :  { %553 = vadd.xlane.f32.xlu2 %v552_v56  ;;  %v545_v63 = vpop.xlane.xlu1 %544 }
 0x638   :  { %v547_v57 = vmul.f32 %v545_v63, %v1724_v10 }
 0x63a   :  { %v549_v58 = vsub.f32 %v537_v50, %v547_v57 }
 0x63c   :  { %v551_v59 = vmul.f32 %v549_v58, %v549_v58 }
 0x63e   :  { %v555_v60 = vsel %vm46_vm0, %v551_v59, 0.0 }
 0x63f   :  { %556 = vadd.xlane.f32.xlu0 %v555_v60 }
 0x6aa   :  { %v554_v1 = vpop.xlane.xlu2 %553 }
 0x6ab   :  { %v558_v2 = vmul.f32 %v554_v1, %v1724_v10 }
 0x6ad   :  { %v560_v3 = vadd.f32 1e-05, %v558_v2 }
 0x6af   :  { %1601 = vrsqrt.f32 %v560_v3  ;;  %vm568_vm10 = vweird.f32 %v560_v3 }
 0x6b2   :  { %v557_v5 = vpop.xlane.xlu0 %556 }
 0x6b3   :  { %v559_v6 = vmul.f32 %v557_v5, %v1724_v10 }
 0x6b5   :  { %v1602_v7 = vpop.eup %1601  ;;  %v561_v8 = vadd.f32 1e-05, %v559_v6 }
 0x6b6   :  { %v563_v9 = vmul.f32 %v1602_v7, %v560_v3  ;;  %vm569_vm9 = vweird.f32 %v1602_v7 }
 0x6b7   :  { %1603 = vrsqrt.f32 %v561_v8  ;;  %vm570_vm11 = vmor %vm568_vm10, %vm569_vm9  ;;  %vm578_vm13 = vweird.f32 %v561_v8 }
 0x6b8   :  { %v564_v11 = vmul.f32 %v1602_v7, %v563_v9 }
 0x6ba   :  { %v565_v12 = vmul.f32 0.5, %v564_v11 }
 0x6bc   :  { %v566_v13 = vsub.f32 1.5, %v565_v12 }
 0x6bd   :  { %v1604_v14 = vpop.eup %1603 }
 0x6be   :  { %v567_v15 = vmul.f32 %v1602_v7, %v566_v13  ;;  %v573_v16 = vmul.f32 %v1604_v14, %v561_v8  ;;  %vm579_vm12 = vweird.f32 %v1604_v14 }
 0x6bf   :  { %vm580_vm14 = vmor %vm578_vm13, %vm579_vm12 }
 0x6c0   :  { %v571_v18 = vsel %vm570_vm11, %v1602_v7, %v567_v15  ;;  %v574_v19 = vmul.f32 %v1604_v14, %v573_v16 }
 0x6c1   :  { %v582_v20 = vmul.f32 %v571_v18, %v548_v54 }
 0x6c2   :  { %v575_v22 = vmul.f32 0.5, %v574_v19 }
 0x6c3   :  { %v585_v23 = vmul.f32 %v1558_v17, %v582_v20  ;;  %v742_v20 = vld [vmem:[#allocation2 + $0x118] sm:$0xff] }
 0x6c4   :  { %v576_v24 = vsub.f32 1.5, %v575_v22  ;;  %v752_v22 = vld [vmem:[#allocation2 + $0x158] sm:$0xff]  ;;  %779 = vmatpush.msrb.mxu2 %v742_v20 }
 0x6c5   :  { %v588_v25 = vadd.f32 %v1559_v21, %v585_v23  ;;  %829 = vmatpush.msra.mxu0 %v752_v22  ;;  %v741_v23 = vld [vmem:[#allocation2 + $0x110] sm:$0xff]  ;;  %v940_v20 = vld [vmem:[#allocation2 + $0x1d8] sm:$0xff] }
 0x6c6   :  { %v577_v26 = vmul.f32 %v1604_v14, %v576_v24  ;;  %v746_v24 = vld [vmem:[#allocation2 + $0x130] sm:$0xff]  ;;  %780 = vmatpush.msrb.mxu2 %v741_v23 }
 0x6c7   :  { %1478 = vmatmul.msk.f32.vlgmr.msrb.gmra.mxu0 %vm46_vm0, %v588_v25  ;;  %v939_v22 = vld [vmem:[#allocation2 + $0x1d0] sm:$0xff] }
 0x6c8   :  { %v581_v27 = vsel %vm580_vm14, %v1604_v14, %v577_v26  ;;  %v740_v26 = vld [vmem:[#allocation2 + $0x108] sm:$0xff]  ;;  %v1567_v23 = vld [vmem:[%s2113_s4 + $0x13] ss:$0 sm:$0xff] }
 0x6c9   :  { %v583_v28 = vmul.f32 %v581_v27, %v549_v58  ;;  %v745_v27 = vld [vmem:[#allocation2 + $0x128] sm:$0xff]  ;;  %781 = vmatpush.msrb.mxu2 %v740_v26 }
 0x6cb   :  { %v586_v29 = vmul.f32 %v1558_v17, %v583_v28  ;;  %v750_v28 = vld [vmem:[#allocation2 + $0x148] sm:$0xff] }
 0x6cd   :  { %v589_v31 = vadd.f32 %v1559_v21, %v586_v29  ;;  %v747_v21 = vld [vmem:[#allocation2 + $0x138] sm:$0xff]  ;;  %v739_v29 = vld [vmem:[#allocation2 + $0x100] sm:$0xff] }
 0x6ce   :  { %804 = vmatpush.msrb.mxu3 %v747_v21  ;;  %782 = vmatpush.msrb.mxu2 %v739_v29 }
 0x6cf   :  { %1479 = vmatmul.msk.f32.gmra.mxu0 %vm46_vm0, %v589_v31 }
 0x6d0   :  { %805 = vmatpush.msrb.mxu3 %v746_v24  ;;  %v938_v24 = vld [vmem:[#allocation2 + $0x1c8] sm:$0xff] }
 0x6d2   :  { %806 = vmatpush.msrb.mxu3 %v745_v27  ;;  %v937_v27 = vld [vmem:[#allocation2 + $0x1c0] sm:$0xff] }
 0x744   :  { %v628_v42 = vpop.f32.mrf.mxu0 }
 0x745   :  { %v629_v43 = vadd.f32 %v1560_v41, %v628_v42  ;;  %v928_v42 = vld [vmem:[#allocation2 + $0x188] sm:$0xff] }
 0x747   :  { %v636_v44 = vmul.f32 0.044715, %v629_v43  ;;  %v634_v63 = vmul.f32 0.5, %v629_v43 }
 0x749   :  { %v638_v45 = vmul.f32 %v636_v44, %v629_v43 }
 0x74b   :  { %v640_v46 = vmul.f32 %v638_v45, %v629_v43  ;;  %v927_v45 = vld [vmem:[#allocation2 + $0x180] sm:$0xff] }
 0x74c   :  { %v631_v47 = vpop.f32.mrf.mxu0 }
 0x74d   :  { %v642_v48 = vadd.f32 %v640_v46, %v629_v43  ;;  %v632_v49 = vadd.f32 %v1560_v41, %v631_v47  ;;  %v933_v43 = vld [vmem:[#allocation2 + $0x1a8] sm:$0xff]  ;;  %v932_v46 = vld [vmem:[#allocation2 + $0x1a0] sm:$0xff] }
 0x74f   :  { %v644_v50 = vmul.f32 0.7978846, %v642_v48  ;;  %v637_v51 = vmul.f32 0.044715, %v632_v49  ;;  %v635_v60 = vmul.f32 0.5, %v632_v49 }
 0x751   :  { %1605 = vtanh.f32 %v644_v50  ;;  %v639_v52 = vmul.f32 %v637_v51, %v632_v49 }
 0x753   :  { %v641_v53 = vmul.f32 %v639_v52, %v632_v49 }
 0x755   :  { %v643_v54 = vadd.f32 %v641_v53, %v632_v49 }
 0x757   :  { %v1606_v55 = vpop.eup %1605  ;;  %v645_v56 = vmul.f32 0.7978846, %v643_v54 }
 0x758   :  { %v648_v57 = vadd.f32 1.0, %v1606_v55 }
 0x759   :  { %1607 = vtanh.f32 %v645_v56  ;;  %v1562_v56 = vld [vmem:[%s2113_s4 + $0xb] ss:$0 sm:$0xff] }
 0x75a   :  { %v650_v58 = vmul.f32 %v648_v57, %v634_v63 }
 0x75c   :  { %1480 = vmatmul.msk.f32.vlgmr.msrb.gmra.mxu1 %vm654_vm15, %v650_v58  ;;  %v1563_v58 = vld [vmem:[%s2113_s4 + $0xc] ss:$0 sm:$0xff] }
 0x75f   :  { %v1608_v59 = vpop.eup %1607 }
 0x760   :  { %v649_v4 = vadd.f32 1.0, %v1608_v59 }
 0x762   :  { %v651_v61 = vmul.f32 %v649_v4, %v635_v60 }
 0x764   :  { %1481 = vmatmul.msk.f32.gmra.mxu1 %vm654_vm15, %v651_v61 }
 0x7d9   :  { %v678_v0 = vpop.f32.mrf.mxu1 }
 0x7da   :  { %v679_v1 = vadd.f32 %v1561_v62, %v678_v0 }
 0x7dc   :  { %v684_v2 = vadd.f32 %v679_v1, %v588_v25  ;;  %v751_v25 = vld [vmem:[#allocation2 + $0x150] sm:$0xff] }
 0x7dd   :  { %830 = vmatpush.msra.mxu0 %v751_v25 }
 0x7de   :  { %v688_v3 = vsel %vm46_vm0, %v684_v2, 0.0 }
 0x7df   :  { %689 = vadd.xlane.f32.xlu1 %v688_v3  ;;  %831 = vmatpush.msra.mxu0 %v750_v28 }
 0x7e1   :  { %v681_v5 = vpop.f32.mrf.mxu1  ;;  %832 = vmatpush.msra.mxu0 %v749_v32 }
 0x7e2   :  { %v682_v6 = vadd.f32 %v1561_v62, %v681_v5 }
 0x7e3   :  { %985 = vmatpush.msrb.mxu0 %v935_v38 }
 0x7e4   :  { %v685_v7 = vadd.f32 %v682_v6, %v589_v31  ;;  %v744_v31 = vld [vmem:[#allocation2 + $0x120] sm:$0xff] }
 0x7e5   :  { %807 = vmatpush.msrb.mxu3 %v744_v31  ;;  %986 = vmatpush.msrb.mxu0 %v934_v40  ;;  %v1569_v40 = vld [vmem:[%s2113_s4 + $0x15] ss:$0 sm:$0xff] }
 0x7e6   :  { %v691_v8 = vsel %vm46_vm0, %v685_v7, 0.0 }
 0x7e7   :  { %692 = vadd.xlane.f32.xlu2 %v691_v8  ;;  %960 = vmatpush.msra.mxu3 %v930_v37  ;;  %v1564_v8 = vld [vmem:[%s2113_s4 + $0x14] ss:$0 sm:$0xff] }
 0x7e8   :  { %987 = vmatpush.msrb.mxu0 %v933_v43 }
 0x7e9   :  { %961 = vmatpush.msra.mxu3 %v929_v39 }
 0x7ea   :  { %988 = vmatpush.msrb.mxu0 %v932_v46 }
 0x7eb   :  { %962 = vmatpush.msra.mxu3 %v928_v42 }
 0x7ed   :  { %963 = vmatpush.msra.mxu3 %v927_v45 }
 0x852   :  { %v690_v9 = vpop.xlane.xlu1 %689 }
 0x853   :  { %v694_v11 = vmul.f32 %v690_v9, %v1724_v10 }
 0x855   :  { %v1900_v12 = vsub.f32 %v684_v2, %v694_v11 }
 0x857   :  { %v698_v13 = vmul.f32 %v1900_v12, %v1900_v12 }
 0x859   :  { %v700_v14 = vsel %vm46_vm0, %v698_v13, 0.0  ;;  %v1566_v13 = vld [vmem:[%s2113_s4 + $0x12] ss:$0 sm:$0xff] }
 0x85a   :  { %v693_v15 = vpop.xlane.xlu2 %692  ;;  %701 = vadd.xlane.f32.xlu0 %v700_v14 }
 0x85b   :  { %v695_v16 = vmul.f32 %v693_v15, %v1724_v10 }
 0x85d   :  { %v1906_v17 = vsub.f32 %v685_v7, %v695_v16 }
 0x85f   :  { %v699_v18 = vmul.f32 %v1906_v17, %v1906_v17 }
 0x861   :  { %v703_v19 = vsel %vm46_vm0, %v699_v18, 0.0  ;;  %v1565_v18 = vld [vmem:[%s2113_s4 + $0x10] ss:$0 sm:$0xff] }
 0x862   :  { %704 = vadd.xlane.f32.xlu1 %v703_v19 }
 0x8cd   :  { %v702_v33 = vpop.xlane.xlu0 %701 }
 0x8ce   :  { %v706_v35 = vmul.f32 %v702_v33, %v1724_v10 }
 0x8d0   :  { %v708_v36 = vadd.f32 1e-05, %v706_v35 }
 0x8d2   :  { %1609 = vrsqrt.f32 %v708_v36  ;;  %vm716_vm2 = vweird.f32 %v708_v36 }
 0x8d5   :  { %v705_v41 = vpop.xlane.xlu1 %704 }
 0x8d6   :  { %v707_v44 = vmul.f32 %v705_v41, %v1724_v10 }
 0x8d8   :  { %v1610_v47 = vpop.eup %1609  ;;  %v709_v48 = vadd.f32 1e-05, %v707_v44 }
 0x8d9   :  { %v711_v49 = vmul.f32 %v1610_v47, %v708_v36  ;;  %vm717_vm1 = vweird.f32 %v1610_v47 }
 0x8da   :  { %1611 = vrsqrt.f32 %v709_v48  ;;  %vm718_vm3 = vmor %vm716_vm2, %vm717_vm1  ;;  %vm726_vm5 = vweird.f32 %v709_v48 }
 0x8db   :  { %v712_v50 = vmul.f32 %v1610_v47, %v711_v49 }
 0x8dd   :  { %v713_v51 = vmul.f32 0.5, %v712_v50 }
 0x8df   :  { %v714_v52 = vsub.f32 1.5, %v713_v51 }
 0x8e0   :  { %v1612_v53 = vpop.eup %1611 }
 0x8e1   :  { %v715_v54 = vmul.f32 %v1610_v47, %v714_v52  ;;  %v721_v55 = vmul.f32 %v1612_v53, %v709_v48  ;;  %vm727_vm4 = vweird.f32 %v1612_v53 }
 0x8e2   :  { %vm728_vm6 = vmor %vm726_vm5, %vm727_vm4  ;;  %vm1374_vm4 = vcmask 1040384  }
 0x8e3   :  { %v719_v63 = vsel %vm718_vm3, %v1610_v47, %v715_v54  ;;  %v722_v57 = vmul.f32 %v1612_v53, %v721_v55  ;;  %v757_v55 = vld [vmem:[#allocation2 + $0x178] sm:$0xff] }
 0x8e4   :  { %v730_v59 = vmul.f32 %v719_v63, %v1900_v12  ;;  %v755_v63 = vld [vmem:[#allocation2 + $0x168] sm:$0xff] }
 0x8e5   :  { %v723_v60 = vmul.f32 0.5, %v722_v57 }
 0x8e6   :  { %v733_v4 = vmul.f32 %v1562_v56, %v730_v59 }
 0x8e7   :  { %v724_v61 = vsub.f32 1.5, %v723_v60 }
 0x8e8   :  { %v1920_v62 = vadd.f32 %v1563_v58, %v733_v4 }
 0x8e9   :  { %v725_v0 = vmul.f32 %v1612_v53, %v724_v61 }
 0x8ea   :  { %1483 = vmatmul.msk.f32.vlgmr.msrb.gmra.mxu2 %vm46_vm0, %v1920_v62  ;;  %1486 = vmatmul.msk.f32.vlgmr.msrb.gmra.mxu3 %vm46_vm0, %v1920_v62 }
 0x8eb   :  { %v729_v1 = vsel %vm728_vm6, %v1612_v53, %v725_v0  ;;  %1489 = vmatmul.msk.f32.vlgmr.msra.gmra.mxu0 %vm46_vm0, %v1920_v62  ;;  %v1568_v0 = vld [vmem:[%s2113_s4 + $0x11] ss:$0 sm:$0xff] }
 0x8ec   :  { %v731_v2 = vmul.f32 %v729_v1, %v1906_v17 }
 0x8ee   :  { %v734_v3 = vmul.f32 %v1562_v56, %v731_v2  ;;  %v756_v56 = vld [vmem:[#allocation2 + $0x170] sm:$0xff] }
 0x8f0   :  { %v1929_v5 = vadd.f32 %v1563_v58, %v734_v3 }
 0x8f2   :  { %1484 = vmatmul.msk.f32.gmra.mxu2 %vm46_vm0, %v1929_v5  ;;  %1487 = vmatmul.msk.f32.gmra.mxu3 %vm46_vm0, %v1929_v5 }
 0x8f3   :  { %1490 = vmatmul.msk.f32.gmra.mxu0 %vm46_vm0, %v1929_v5 }
 0x8fa   :  { %1498 = vmatmul.msk.f32.vlgmr.msra.gmra.mxu3 %vm46_vm0, %v1920_v62 }
 0x8fb   :  { %1501 = vmatmul.msk.f32.vlgmr.msrb.gmra.mxu0 %vm46_vm0, %v1920_v62 }
 0x902   :  { %1499 = vmatmul.msk.f32.gmra.mxu3 %vm46_vm0, %v1929_v5 }
 0x903   :  { %1502 = vmatmul.msk.f32.gmra.mxu0 %vm46_vm0, %v1929_v5 }
 0x968   :  { %v834_v6 = vpop.f32.mrf.mxu0 }
 0x969   :  { %v835_v12 = vadd.f32 %v1564_v8, %v834_v6  ;;  %v754_v6 = vld [vmem:[#allocation2 + $0x160] sm:$0xff] }
 0x96d   :  { %v809_v7 = vpop.f32.mrf.mxu3  ;;  %v784_v16 = vpop.f32.mrf.mxu2 }
 0x96e   :  { %v810_v19 = vadd.f32 %v1566_v13, %v809_v7  ;;  %v785_v21 = vadd.f32 %v1565_v18, %v784_v16 }
 0x970   :  { %v837_v9 = vpop.f32.mrf.mxu0 }
 0x971   :  { %v838_v11 = vadd.f32 %v1564_v8, %v837_v9 }
 0x973   :  { %917 = vmatpush.msra.mxu2 %v838_v11 }
 0x975   :  { %918 = vmatpush.msra.mxu2 %v835_v12  ;;  %v812_v14 = vpop.f32.mrf.mxu3  ;;  %v787_v28 = vpop.f32.mrf.mxu2 }
 0x976   :  { %v813_v15 = vadd.f32 %v1566_v13, %v812_v14  ;;  %v788_v29 = vadd.f32 %v1565_v18, %v787_v28 }
 0x978   :  { %v990_v17 = vpop.f32.mrf.mxu0  ;;  %1491 = vmatpush.xpose.msk.msra.mxu1 %vm46_vm0, %v813_v15 }
 0x979   :  { %v991_v31 = vadd.f32 %v1567_v23, %v990_v17 }
 0x97c   :  { %1492 = vmatpush.xpose.msk.msra.mxu1 %vm46_vm0, %v810_v19 }
 0x97d   :  { %v965_v61 = vpop.f32.mrf.mxu3 }
 0x97e   :  { %v966_v1 = vadd.f32 %v1568_v0, %v965_v61 }
 0x97f   :  { %1493 = vmatmul.msk.f32.vlgmr.msra.gmra.mxu1 %vm46_vm0, %v785_v21 }
 0x980   :  { %1010 = vmatpush.msrb.mxu1 %v940_v20  ;;  %v993_v25 = vpop.f32.mrf.mxu0 }
 0x981   :  { %v994_v26 = vadd.f32 %v1567_v23, %v993_v25  ;;  %v944_v25 = vld [vmem:[#allocation2 + $0x1f0] sm:$0xff] }
 0x982   :  { %1011 = vmatpush.msrb.mxu1 %v939_v22 }
 0x983   :  { %1506 = vmatpush.xpose.msk.msrb.mxu2 %vm46_vm0, %v994_v26  ;;  %v943_v26 = vld [vmem:[#allocation2 + $0x1e8] sm:$0xff] }
 0x984   :  { %1012 = vmatpush.msrb.mxu1 %v938_v24 }
 0x985   :  { %v968_v2 = vpop.f32.mrf.mxu3 }
 0x986   :  { %1013 = vmatpush.msrb.mxu1 %v937_v27  ;;  %v969_v3 = vadd.f32 %v1568_v0, %v968_v2 }
 0x987   :  { %1507 = vmatpush.xpose.msk.msrb.mxu2 %vm46_vm0, %v991_v31  ;;  %1494 = vmatmul.msk.f32.gmra.mxu1 %vm46_vm0, %v788_v29 }
 0x988   :  { %1154 = vmatpush.msra.mxu1 %v757_v55 }
 0x98a   :  { %1155 = vmatpush.msra.mxu1 %v756_v56 }
 0x98c   :  { %1156 = vmatpush.msra.mxu1 %v755_v63 }
 0x98e   :  { %1157 = vmatpush.msra.mxu1 %v754_v6 }
 0x98f   :  { %1504 = vmatmul.msk.f32.vlgmr.msrb.gmra.mxu1 %vm46_vm0, %v1920_v62 }
 0x997   :  { %1505 = vmatmul.msk.f32.gmra.mxu1 %vm46_vm0, %v1929_v5 }
 0x9fc   :  { %v869_v32 = vpop.f32.mrf.mxu1 }
 0x9fd   :  { %v870_v33 = vadd.f32 %v869_v32, %v1797_v30 }
 0x9ff   :  { %v875_v35 = vsel %vm241_vm8, %v870_v33, -inf }
 0xa00   :  { %876 = vmax.xlane.f32.xlu2 %v875_v35  ;;  %v942_v35 = vld [vmem:[#allocation2 + $0x1e0] sm:$0xff] }
 0xa04   :  { %v872_v36 = vpop.f32.mrf.mxu1 }
 0xa05   :  { %v873_v37 = vadd.f32 %v872_v36, %v1804_v34 }
 0xa07   :  { %v878_v38 = vsel %vm241_vm8, %v873_v37, -inf }
 0xa08   :  { %879 = vmax.xlane.f32.xlu0 %v878_v38 }
 0xa0c   :  { %v1015_v39 = vpop.f32.mrf.mxu1 }
 0xa0d   :  { %v1016_v43 = vadd.f32 %v1569_v40, %v1015_v39  ;;  %v1570_v39 = vld [vmem:[%s2113_s4 + $0x16] ss:$0 sm:$0xff] }
 0xa14   :  { %v1018_v41 = vpop.f32.mrf.mxu1 }
 0xa15   :  { %v1019_v42 = vadd.f32 %v1569_v40, %v1018_v41 }
 0xa17   :  { %1098 = vmatpush.msrb.mxu3 %v1019_v42 }
 0xa19   :  { %1099 = vmatpush.msrb.mxu3 %v1016_v43 }
 0xa73   :  { %v877_v44 = vpop.xlane.xlu2 %876 }
 0xa74   :  { %v881_v45 = vsub.f32 %v870_v33, %v877_v44 }
 0xa76   :  { %v883_v46 = vmul.f32 1.442695, %v881_v45 }
 0xa78   :  { %1613 = vpow2.f32 %v883_v46 }
 0xa7b   :  { %v880_v47 = vpop.xlane.xlu0 %879 }
 0xa7c   :  { %v882_v48 = vsub.f32 %v873_v37, %v880_v47 }
 0xa7e   :  { %v1614_v49 = vpop.eup %1613  ;;  %v885_v50 = vmul.f32 1.442695, %v882_v48 }
 0xa7f   :  { %v887_v51 = vsel %vm241_vm8, %v1614_v49, 0.0 }
 0xa80   :  { %1615 = vpow2.f32 %v885_v50  ;;  %888 = vadd.xlane.f32.xlu1 %v887_v51 }
 0xa86   :  { %v1616_v52 = vpop.eup %1615 }
 0xa87   :  { %v890_v53 = vsel %vm241_vm8, %v1616_v52, 0.0 }
 0xa88   :  { %891 = vadd.xlane.f32.xlu2 %v890_v53 }
 0xaf3   :  { %v889_v54 = vpop.xlane.xlu1 %888 }
 0xaf4   :  { %1617 = vrcp.f32 %v889_v54 }
 0xafa   :  { %v1618_v57 = vpop.eup %1617 }
 0xafb   :  { %v895_v58 = vmul.f32 %v1618_v57, %v1614_v49  ;;  %v892_v59 = vpop.xlane.xlu2 %891 }
 0xafc   :  { %1619 = vrcp.f32 %v892_v59  ;;  %v1521_v59 = vld [vmem:[%s2112_s3 + $0x90] sm:$0xff] }
 0xafd   :  { %1495 = vmatmul.msk.f32.vlgmr.msra.gmra.mxu2 %vm241_vm8, %v895_v58 }
 0xb02   :  { %v1620_v60 = vpop.eup %1619 }
 0xb03   :  { %v896_v4 = vmul.f32 %v1620_v60, %v1616_v52  ;;  %v1520_v60 = vld [vmem:[%s2112_s3 + $0x88] sm:$0xff] }
 0xb05   :  { %1496 = vmatmul.msk.f32.gmra.mxu2 %vm241_vm8, %v896_v4  ;;  %v1519_v4 = vld [vmem:[%s2112_s3 + $0x80] sm:$0xff] }
 0xb0d   :  { %1508 = vmatmul.msk.f32.vlgmr.msrb.gmra.mxu2 %vm46_vm0, %v966_v1 }
 0xb15   :  { %1509 = vmatmul.msk.f32.gmra.mxu2 %vm46_vm0, %v969_v3 }
 0xb80   :  { %v920_v7 = vpop.f32.mrf.mxu2 }
 0xb81   :  { %1514 = vmatmul.msk.f32.vlgmr.msra.gmra.mxu1 %vm46_vm0, %v920_v7 }
 0xb88   :  { %v923_v8 = vpop.f32.mrf.mxu2 }
 0xb89   :  { %1515 = vmatmul.msk.f32.gmra.mxu1 %vm46_vm0, %v923_v8 }
 0xb90   :  { %v1050_v9 = vpop.f32.mrf.mxu2 }
 0xb91   :  { %v1051_v11 = vadd.f32 %v1050_v9, %v1797_v30 }
 0xb93   :  { %v1056_v12 = vsel %vm241_vm8, %v1051_v11, -inf }
 0xb94   :  { %1057 = vmax.xlane.f32.xlu0 %v1056_v12 }
 0xb98   :  { %v1053_v13 = vpop.f32.mrf.mxu2 }
 0xb99   :  { %v1054_v14 = vadd.f32 %v1053_v13, %v1804_v34  ;;  %v945_v34 = vld [vmem:[#allocation2 + $0x1f8] sm:$0xff] }
 0xb9a   :  { %1125 = vmatpush.msra.mxu0 %v945_v34 }
 0xb9b   :  { %v1059_v15 = vsel %vm241_vm8, %v1054_v14, -inf }
 0xb9c   :  { %1060 = vmax.xlane.f32.xlu1 %v1059_v15  ;;  %1126 = vmatpush.msra.mxu0 %v944_v25 }
 0xb9e   :  { %1127 = vmatpush.msra.mxu0 %v943_v26 }
 0xba0   :  { %1128 = vmatpush.msra.mxu0 %v942_v35  ;;  %v1525_v35 = vld [vmem:[%s2112_s3 + $0xd0] sm:$0xff] }
 0xbfe   :  { %v1159_v38 = vpop.f32.mrf.mxu1 }
 0xc06   :  { %v1162_v45 = vpop.f32.mrf.mxu1 }
 0xc07   :  { %v1058_v16 = vpop.xlane.xlu0 %1057 }
 0xc08   :  { %v1062_v17 = vsub.f32 %v1051_v11, %v1058_v16  ;;  %v1571_v16 = vld [vmem:[%s2113_s4 + $0x17] ss:$0 sm:$0xff] }
 0xc0a   :  { %v1064_v18 = vmul.f32 1.442695, %v1062_v17 }
 0xc0c   :  { %1621 = vpow2.f32 %v1064_v18 }
 0xc0f   :  { %v1061_v19 = vpop.xlane.xlu1 %1060 }
 0xc10   :  { %v1063_v20 = vsub.f32 %v1054_v14, %v1061_v19 }
 0xc12   :  { %v1622_v21 = vpop.eup %1621  ;;  %v1066_v22 = vmul.f32 1.442695, %v1063_v20  ;;  %v1572_v20 = vld [vmem:[%s2113_s4 + $0x18] ss:$0 sm:$0xff] }
 0xc13   :  { %v1068_v23 = vsel %vm241_vm8, %v1622_v21, 0.0 }
 0xc14   :  { %1623 = vpow2.f32 %v1066_v22  ;;  %1069 = vadd.xlane.f32.xlu2 %v1068_v23 }
 0xc1a   :  { %v1624_v30 = vpop.eup %1623 }
 0xc1b   :  { %v1071_v24 = vsel %vm241_vm8, %v1624_v30, 0.0 }
 0xc1c   :  { %1072 = vadd.xlane.f32.xlu0 %v1071_v24 }
 0xc87   :  { %v1070_v27 = vpop.xlane.xlu2 %1069 }
 0xc88   :  { %1625 = vrcp.f32 %v1070_v27 }
 0xc8e   :  { %v1626_v28 = vpop.eup %1625 }
 0xc8f   :  { %v1076_v29 = vmul.f32 %v1626_v28, %v1622_v21  ;;  %v1073_v31 = vpop.xlane.xlu0 %1072  ;;  %v1530_v28 = vld [vmem:[%s2112_s3 + $0xf8] sm:$0xff] }
 0xc90   :  { %1627 = vrcp.f32 %v1073_v31  ;;  %1302 = vmatpush.msra.mxu3 %v1530_v28  ;;  %v1528_v31 = vld [vmem:[%s2112_s3 + $0xe8] sm:$0xff] }
 0xc91   :  { %1510 = vmatmul.msk.f32.vlgmr.msrb.gmra.mxu3 %vm241_vm8, %v1076_v29  ;;  %v1529_v29 = vld [vmem:[%s2112_s3 + $0xf0] sm:$0xff] }
 0xc92   :  { %1303 = vmatpush.msra.mxu3 %v1529_v29 }
 0xc94   :  { %1304 = vmatpush.msra.mxu3 %v1528_v31 }
 0xc96   :  { %v1628_v32 = vpop.eup %1627 }
 0xc97   :  { %v1077_v33 = vmul.f32 %v1628_v32, %v1624_v30  ;;  %v1527_v32 = vld [vmem:[%s2112_s3 + $0xe0] sm:$0xff] }
 0xc98   :  { %1305 = vmatpush.msra.mxu3 %v1527_v32 }
 0xc99   :  { %1511 = vmatmul.msk.f32.gmra.mxu3 %vm241_vm8, %v1077_v33  ;;  %v1526_v33 = vld [vmem:[%s2112_s3 + $0xd8] sm:$0xff] }
 0xc9a   :  { %1306 = vmatpush.msra.mxu3 %v1526_v33 }
 0xc9c   :  { %1307 = vmatpush.msra.mxu3 %v1525_v35 }
 0xd14   :  { %v1101_v36 = vpop.f32.mrf.mxu3 }
 0xd15   :  { %1512 = vmatmul.msk.f32.vlgmr.msra.gmra.mxu0 %vm46_vm0, %v1101_v36  ;;  %v1524_v36 = vld [vmem:[%s2112_s3 + $0xc8] sm:$0xff] }
 0xd16   :  { %1308 = vmatpush.msra.mxu3 %v1524_v36 }
 0xd1c   :  { %v1104_v37 = vpop.f32.mrf.mxu3 }
 0xd1d   :  { %1513 = vmatmul.msk.f32.gmra.mxu0 %vm46_vm0, %v1104_v37  ;;  %v1523_v37 = vld [vmem:[%s2112_s3 + $0xc0] sm:$0xff] }
 0xd1e   :  { %1309 = vmatpush.msra.mxu3 %v1523_v37 }
 0xd92   :  { %v1130_v40 = vpop.f32.mrf.mxu0 }
 0xd93   :  { %v1160_v41 = vadd.f32 %v1159_v38, %v1130_v40  ;;  %v1573_v38 = vld [vmem:[%s2113_s4 + $0x19] ss:$0 sm:$0xff] }
 0xd95   :  { %v1167_v42 = vadd.f32 %v1570_v39, %v1160_v41 }
 0xd97   :  { %v1169_v43 = vadd.f32 %v1167_v42, %v1920_v62 }
 0xd99   :  { %v1173_v44 = vsel %vm46_vm0, %v1169_v43, 0.0 }
 0xd9a   :  { %1174 = vadd.xlane.f32.xlu1 %v1173_v44  ;;  %v1133_v46 = vpop.f32.mrf.mxu0 }
 0xd9b   :  { %v1163_v47 = vadd.f32 %v1162_v45, %v1133_v46 }
 0xd9d   :  { %v1168_v48 = vadd.f32 %v1570_v39, %v1163_v47 }
 0xd9f   :  { %v1170_v49 = vadd.f32 %v1168_v48, %v1929_v5  ;;  %v1522_v5 = vld [vmem:[%s2112_s3 + $0x98] sm:$0xff] }
 0xda0   :  { %1257 = vmatpush.msra.mxu2 %v1522_v5  ;;  %v1574_v5 = vld [vmem:[%s2113_s4 + $0x1a] ss:$0 sm:$0xff] }
 0xda1   :  { %v1176_v50 = vsel %vm46_vm0, %v1170_v49, 0.0 }
 0xda2   :  { %1177 = vadd.xlane.f32.xlu2 %v1176_v50  ;;  %1258 = vmatpush.msra.mxu2 %v1521_v59 }
 0xda4   :  { %1259 = vmatpush.msra.mxu2 %v1520_v60 }
 0xda6   :  { %1260 = vmatpush.msra.mxu2 %v1519_v4 }
 0xe0d   :  { %v1175_v51 = vpop.xlane.xlu1 %1174 }
 0xe0e   :  { %v1179_v52 = vmul.f32 %v1175_v51, %v1724_v10 }
 0xe10   :  { %v1181_v53 = vsub.f32 %v1169_v43, %v1179_v52 }
 0xe12   :  { %v1183_v54 = vmul.f32 %v1181_v53, %v1181_v53 }
 0xe14   :  { %v1185_v55 = vsel %vm46_vm0, %v1183_v54, 0.0 }
 0xe15   :  { %1186 = vadd.xlane.f32.xlu0 %v1185_v55  ;;  %v1178_v62 = vpop.xlane.xlu2 %1177 }
 0xe16   :  { %v1180_v56 = vmul.f32 %v1178_v62, %v1724_v10 }
 0xe18   :  { %v1182_v63 = vsub.f32 %v1170_v49, %v1180_v56 }
 0xe1a   :  { %v1184_v57 = vmul.f32 %v1182_v63, %v1182_v63 }
 0xe1c   :  { %v1188_v58 = vsel %vm46_vm0, %v1184_v57, 0.0 }
 0xe1d   :  { %1189 = vadd.xlane.f32.xlu1 %v1188_v58 }
 0xe88   :  { %v1187_v61 = vpop.xlane.xlu0 %1186 }
 0xe89   :  { %v1191_v0 = vmul.f32 %v1187_v61, %v1724_v10 }
 0xe8b   :  { %v1193_v1 = vadd.f32 1e-05, %v1191_v0 }
 0xe8d   :  { %1629 = vrsqrt.f32 %v1193_v1  ;;  %vm1201_vm8 = vweird.f32 %v1193_v1 }
 0xe90   :  { %v1190_v2 = vpop.xlane.xlu1 %1189 }
 0xe91   :  { %v1192_v3 = vmul.f32 %v1190_v2, %v1724_v10 }
 0xe93   :  { %v1630_v6 = vpop.eup %1629  ;;  %v1194_v7 = vadd.f32 1e-05, %v1192_v3 }
 0xe94   :  { %v1196_v8 = vmul.f32 %v1630_v6, %v1193_v1  ;;  %vm1202_vm7 = vweird.f32 %v1630_v6 }
 0xe95   :  { %1631 = vrsqrt.f32 %v1194_v7  ;;  %vm1203_vm9 = vmor %vm1201_vm8, %vm1202_vm7  ;;  %vm1211_vm11 = vweird.f32 %v1194_v7 }
 0xe96   :  { %v1197_v9 = vmul.f32 %v1630_v6, %v1196_v8 }
 0xe98   :  { %v1198_v11 = vmul.f32 0.5, %v1197_v9 }
 0xe9a   :  { %v1199_v12 = vsub.f32 1.5, %v1198_v11 }
 0xe9b   :  { %v1632_v13 = vpop.eup %1631 }
 0xe9c   :  { %v1200_v14 = vmul.f32 %v1630_v6, %v1199_v12  ;;  %v1206_v15 = vmul.f32 %v1632_v13, %v1194_v7  ;;  %vm1212_vm10 = vweird.f32 %v1632_v13 }
 0xe9d   :  { %vm1213_vm12 = vmor %vm1211_vm11, %vm1212_vm10 }
 0xe9e   :  { %v1204_v17 = vsel %vm1203_vm9, %v1630_v6, %v1200_v14  ;;  %v1207_v18 = vmul.f32 %v1632_v13, %v1206_v15 }
 0xe9f   :  { %v1215_v19 = vmul.f32 %v1204_v17, %v1181_v53 }
 0xea0   :  { %v1208_v21 = vmul.f32 0.5, %v1207_v18 }
 0xea1   :  { %v1218_v22 = vmul.f32 %v1571_v16, %v1215_v19  ;;  %v1379_v19 = vld [vmem:[%s2115_s6 + $0x18] sm:$0xff] }
 0xea2   :  { %v1209_v23 = vsub.f32 1.5, %v1208_v21  ;;  %1397 = vmatpush.msrb.mxu0 %v1379_v19 }
 0xea3   :  { %v1221_v30 = vadd.f32 %v1572_v20, %v1218_v22  ;;  %v1377_v22 = vld [vmem:[%s2115_s6 + $0x8] sm:$0xff] }
 0xea4   :  { %v1210_v24 = vmul.f32 %v1632_v13, %v1209_v23  ;;  %v1376_v23 = vld [vmem:[%s2115_s6] sm:$0xff] }
 0xea5   :  { %1532 = vmatmul.msk.f32.vlgmr.msra.gmra.mxu2 %vm46_vm0, %v1221_v30 }
 0xea6   :  { %v1214_v34 = vsel %vm1213_vm12, %v1632_v13, %v1210_v24 }
 0xea7   :  { %v1216_v25 = vmul.f32 %v1214_v34, %v1182_v63 }
 0xea9   :  { %v1219_v26 = vmul.f32 %v1571_v16, %v1216_v25 }
 0xeab   :  { %v1222_v27 = vadd.f32 %v1572_v20, %v1219_v26  ;;  %v1378_v20 = vld [vmem:[%s2115_s6 + $0x10] sm:$0xff] }
 0xeac   :  { %1398 = vmatpush.msrb.mxu0 %v1378_v20 }
 0xead   :  { %1533 = vmatmul.msk.f32.gmra.mxu2 %vm46_vm0, %v1222_v27 }
 0xeae   :  { %1399 = vmatpush.msrb.mxu0 %v1377_v22 }
 0xeb0   :  { %1400 = vmatpush.msrb.mxu0 %v1376_v23 }
 0xf28   :  { %v1262_v39 = vpop.f32.mrf.mxu2 }
 0xf29   :  { %v1263_v40 = vadd.f32 %v1573_v38, %v1262_v39 }
 0xf2b   :  { %v1270_v41 = vmul.f32 0.044715, %v1263_v40  ;;  %v1268_v54 = vmul.f32 0.5, %v1263_v40 }
 0xf2d   :  { %v1272_v42 = vmul.f32 %v1270_v41, %v1263_v40 }
 0xf2f   :  { %v1274_v43 = vmul.f32 %v1272_v42, %v1263_v40 }
 0xf30   :  { %v1265_v44 = vpop.f32.mrf.mxu2 }
 0xf31   :  { %v1276_v45 = vadd.f32 %v1274_v43, %v1263_v40  ;;  %v1266_v46 = vadd.f32 %v1573_v38, %v1265_v44 }
 0xf33   :  { %v1278_v47 = vmul.f32 0.7978846, %v1276_v45  ;;  %v1271_v48 = vmul.f32 0.044715, %v1266_v46  ;;  %v1269_v63 = vmul.f32 0.5, %v1266_v46 }
 0xf34   :  { %v1576_v45 = vld [vmem:[%s2113_s4 + $0x1c] ss:$0 sm:$0xff] }
 0xf35   :  { %1633 = vtanh.f32 %v1278_v47  ;;  %v1273_v49 = vmul.f32 %v1271_v48, %v1266_v46 }
 0xf37   :  { %v1275_v50 = vmul.f32 %v1273_v49, %v1266_v46 }
 0xf39   :  { %v1277_v51 = vadd.f32 %v1275_v50, %v1266_v46  ;;  %v1543_v50 = vld [vmem:[%s2115_s6 + $0x38] sm:$0xff] }
 0xf3a   :  { %1428 = vmatpush.msrb.mxu1 %v1543_v50 }
 0xf3b   :  { %v1634_v52 = vpop.eup %1633  ;;  %v1279_v53 = vmul.f32 0.7978846, %v1277_v51  ;;  %v1542_v51 = vld [vmem:[%s2115_s6 + $0x30] sm:$0xff] }
 0xf3c   :  { %v1282_v55 = vadd.f32 1.0, %v1634_v52  ;;  %v1541_v52 = vld [vmem:[%s2115_s6 + $0x28] sm:$0xff]  ;;  %1429 = vmatpush.msrb.mxu1 %v1542_v51 }
 0xf3d   :  { %1635 = vtanh.f32 %v1279_v53  ;;  %v1540_v53 = vld [vmem:[%s2115_s6 + $0x20] sm:$0xff] }
 0xf3e   :  { %v1284_v62 = vmul.f32 %v1282_v55, %v1268_v54  ;;  %1430 = vmatpush.msrb.mxu1 %v1541_v52  ;;  %v1577_v54 = vld [vmem:[%s2114_s5 + $0x2] ss:$0 sm:$0xff] }
 0xf40   :  { %1535 = vmatmul.msk.f32.vlgmr.msra.gmra.mxu3 %vm654_vm15, %v1284_v62  ;;  %1431 = vmatpush.msrb.mxu1 %v1540_v53 }
 0xf43   :  { %v1636_v56 = vpop.eup %1635 }
 0xf44   :  { %v1283_v57 = vadd.f32 1.0, %v1636_v56 }
 0xf46   :  { %v1285_v58 = vmul.f32 %v1283_v57, %v1269_v63  ;;  %v1578_v63 = vld [vmem:[%s2114_s5 + $0x3] ss:$0 sm:$0xff] }
 0xf48   :  { %1536 = vmatmul.msk.f32.gmra.mxu3 %vm654_vm15, %v1285_v58 }
 0xfc3   :  { %v1311_v59 = vpop.f32.mrf.mxu3 }
 0xfc4   :  { %v1312_v60 = vadd.f32 %v1574_v5, %v1311_v59 }
 0xfc6   :  { %v1317_v4 = vadd.f32 %v1312_v60, %v1221_v30 }
 0xfc8   :  { %v1321_v61 = vsel %vm46_vm0, %v1317_v4, 0.0 }
 0xfc9   :  { %1322 = vadd.xlane.f32.xlu0 %v1321_v61 }
 0xfcb   :  { %v1314_v0 = vpop.f32.mrf.mxu3 }
 0xfcc   :  { %v1315_v1 = vadd.f32 %v1574_v5, %v1314_v0 }
 0xfce   :  { %v1318_v2 = vadd.f32 %v1315_v1, %v1222_v27 }
 0xfd0   :  { %v1324_v3 = vsel %vm46_vm0, %v1318_v2, 0.0 }
 0xfd1   :  { %1325 = vadd.xlane.f32.xlu2 %v1324_v3 }
0x103c   :  { %v1323_v6 = vpop.xlane.xlu0 %1322 }
0x103d   :  { %v1327_v7 = vmul.f32 %v1323_v6, %v1724_v10 }
0x103f   :  { %v1329_v8 = vsub.f32 %v1317_v4, %v1327_v7 }
0x1041   :  { %v1331_v9 = vmul.f32 %v1329_v8, %v1329_v8 }
0x1043   :  { %v1333_v11 = vsel %vm46_vm0, %v1331_v9, 0.0 }
0x1044   :  { %v1326_v12 = vpop.xlane.xlu2 %1325  ;;  %1334 = vadd.xlane.f32.xlu2 %v1333_v11 }
0x1045   :  { %v1328_v13 = vmul.f32 %v1326_v12, %v1724_v10 }
0x1047   :  { %v1330_v14 = vsub.f32 %v1318_v2, %v1328_v13 }
0x1049   :  { %v1332_v15 = vmul.f32 %v1330_v14, %v1330_v14 }
0x104b   :  { %v1336_v16 = vsel %vm46_vm0, %v1332_v15, 0.0 }
0x104c   :  { %1337 = vadd.xlane.f32.xlu1 %v1336_v16 }
0x10b7   :  { %v1335_v17 = vpop.xlane.xlu2 %1334 }
0x10b8   :  { %v1339_v18 = vmul.f32 %v1335_v17, %v1724_v10 }
0x10ba   :  { %v1341_v21 = vadd.f32 1e-05, %v1339_v18 }
0x10bc   :  { %1637 = vrsqrt.f32 %v1341_v21  ;;  %vm1349_vm14 = vweird.f32 %v1341_v21 }
0x10bf   :  { %v1338_v30 = vpop.xlane.xlu1 %1337 }
0x10c0   :  { %v1340_v24 = vmul.f32 %v1338_v30, %v1724_v10  ;;  %v1575_v10 = vld [vmem:[%s2113_s4 + $0x1b] ss:$0 sm:$0xff] }
0x10c2   :  { %v1638_v34 = vpop.eup %1637  ;;  %v1342_v25 = vadd.f32 1e-05, %v1340_v24 }
0x10c3   :  { %v1344_v26 = vmul.f32 %v1638_v34, %v1341_v21  ;;  %vm1350_vm13 = vweird.f32 %v1638_v34 }
0x10c4   :  { %1639 = vrsqrt.f32 %v1342_v25  ;;  %vm1351_vm15 = vmor %vm1349_vm14, %vm1350_vm13  ;;  %vm1359_vm2 = vweird.f32 %v1342_v25 }
0x10c5   :  { %v1345_v27 = vmul.f32 %v1638_v34, %v1344_v26 }
0x10c7   :  { %v1346_v28 = vmul.f32 0.5, %v1345_v27 }
0x10c9   :  { %v1347_v29 = vsub.f32 1.5, %v1346_v28 }
0x10ca   :  { %v1640_v31 = vpop.eup %1639 }
0x10cb   :  { %v1354_v32 = vmul.f32 %v1640_v31, %v1342_v25  ;;  %v1348_v33 = vmul.f32 %v1638_v34, %v1347_v29  ;;  %vm1360_vm1 = vweird.f32 %v1640_v31 }
0x10cc   :  { %vm1361_vm3 = vmor %vm1359_vm2, %vm1360_vm1 }
0x10cd   :  { %v1355_v35 = vmul.f32 %v1640_v31, %v1354_v32  ;;  %v1352_v37 = vsel %vm1351_vm15, %v1638_v34, %v1348_v33 }
0x10ce   :  { %v1363_v40 = vmul.f32 %v1352_v37, %v1329_v8 }
0x10cf   :  { %v1356_v36 = vmul.f32 0.5, %v1355_v35 }
0x10d0   :  { %v1366_v43 = vmul.f32 %v1575_v10, %v1363_v40 }
0x10d1   :  { %v1357_v38 = vsub.f32 1.5, %v1356_v36 }
0x10d2   :  { %v1369_v47 = vadd.f32 %v1576_v45, %v1366_v43 }
0x10d3   :  { %v1358_v39 = vmul.f32 %v1640_v31, %v1357_v38 }
0x10d5   :  { %v1362_v41 = vsel %vm1361_vm3, %v1640_v31, %v1358_v39 }
0x10d6   :  { %v1364_v42 = vmul.f32 %v1362_v41, %v1330_v14 }
0x10d8   :  { %v1367_v44 = vmul.f32 %v1575_v10, %v1364_v42 }
0x10da   :  { %v1370_v46 = vadd.f32 %v1576_v45, %v1367_v44 }
0x10dc   :  { %v1372_v48 = vrot.slane %v1370_v46, 7 }
0x10de   :  { %v1375_v49 = vsel %vm1374_vm4, %v1369_v47, %v1372_v48 }
0x10df   :  { %1539 = vmatmul.msk.f32.vlgmr.msrb.gmra.mxu0 %vm46_vm0, %v1375_v49 }
0x115c   :  { %v1402_v55 = vpop.f32.mrf.mxu0 }
0x115d   :  { %v1403_v62 = vadd.f32 %v1577_v54, %v1402_v55 }
0x115f   :  { %1641 = vtanh.f32 %v1403_v62 }
0x1165   :  { %v1642_v56 = vpop.eup %1641 }
0x1166   :  { %1544 = vmatmul.msk.f32.vlgmr.msrb.gmra.mxu1 %vm46_vm0, %v1642_v56 }
0x11e3   :  { %v1433_v57 = vpop.f32.mrf.mxu1 }
0x11e4   :  { %v1434_v58 = vadd.f32 %v1578_v63, %v1433_v57 }
0x11e6   :  { %1436 = vst [vmem:[%s2116_s7] sm:$0x3] %v1434_v58 }
0x11e7   :  { %1441 = vsyncpa [#allocation3], 1 }

</bundles_post_ra>
